<compile_context>
chip_gen: v5e
topology: v5e:2x2
jax: 0.10.0
libtpu: 0.0.40
codegen_flags: <defaults>
</compile_context>

<pallas_src>
import functools
import math

import numpy as np
import jax
import jax.numpy as jnp
from jax import lax
from jax.experimental import pallas as pl
from jax.experimental.pallas import tpu as pltpu


# ----------------------------------------------------------------------------
# Trace-time folding: constant deform offsets (== p_conv bias, torchvision
# [dy_0, dx_0, dy_1, dx_1, ...] ordering) + 4-corner bilinear weights.
# ----------------------------------------------------------------------------
def _fold_shift_weights(weight, offset_bias, kernel_size=3, padding=1, dilation=1):
    """Returns {(sy, sx): (Cin, Cout) folded weight} over the distinct integer
    shifts of the sampling corners relative to the output pixel."""
    K = kernel_size
    folded = {}
    for k in range(K * K):
        i, j = divmod(k, K)
        dy = float(offset_bias[2 * k])
        dx = float(offset_bias[2 * k + 1])
        by = i * dilation - padding + dy          # row offset rel. to output row
        bx = j * dilation - padding + dx          # col offset rel. to output col
        fy, fx = math.floor(by), math.floor(bx)
        ty, tx = by - fy, bx - fx
        wk = np.asarray(weight[:, :, i, j], np.float64).T        # (Cin, Cout)
        for ry in (0, 1):
            for rx in (0, 1):
                cw = ((1.0 - ty) if ry == 0 else ty) * ((1.0 - tx) if rx == 0 else tx)
                if cw == 0.0:
                    continue
                s = (fy + ry, fx + rx)
                folded[s] = folded.get(s, 0.0) + cw * wk
    return folded


def _build_layer(weight, bias, offset_bias, W):
    """Concatenated-K block-Toeplitz weight (f32) + lane-repeated bias.
    Lane layout everywhere is planar: lane = channel * W + column.
    Row layout of w_cat: row = shift_block * (Cin*W) + ci*W + input_column."""
    Cout, Cin = weight.shape[0], weight.shape[1]
    folded = _fold_shift_weights(weight, offset_bias)
    row_shifts = sorted({sy for (sy, _sx) in folded})
    S = len(row_shifts)
    w_cat = np.zeros((S * Cin * W, Cout * W), np.float64)
    ci_idx = np.arange(Cin)
    co_idx = np.arange(Cout)
    for (sy, sx), wf in folded.items():
        r = row_shifts.index(sy)
        for w in range(W):
            wp = w + sx
            if 0 <= wp < W:                       # OOB bilinear corners contribute 0
                rows = r * Cin * W + ci_idx * W + wp
                cols = co_idx * W + w
                w_cat[np.ix_(rows, cols)] += wf
    return {
        "Cin": Cin,
        "Cout": Cout,
        "row_shifts": tuple(int(s) for s in row_shifts),
        "w_cat": jnp.asarray(w_cat, jnp.float32),     # keep f32 (review feedback)
        "bias_rep": jnp.asarray(
            np.repeat(np.asarray(bias, np.float64), W)[None, :], jnp.float32),
    }


# ----------------------------------------------------------------------------
# Single fused kernel: conv1 -> BN1(+batch stats) -> ReLU -> conv2 -> BN2 -> ReLU.
# ----------------------------------------------------------------------------
def _fused_kernel(x_ref, w1_ref, b1_ref, g1_ref, be1_ref,
                  w2_ref, b2_ref, g2_ref, be2_ref, rmat_ref,
                  o_ref, ap1, ap2,
                  *, N, H, W, Cin, Cout, shifts1, shifts2, eps):
    f32 = jnp.float32
    inv_cnt = 1.0 / float(N * H * W)
    rmat = rmat_ref[...]                                   # (Cout*W, Cout*W) 0/1

    def batchnorm_relu(y, gamma_rep, beta_rep):
        # y: (N*H, Cout*W).  Per-channel biased batch stats (training mode):
        # replicate/sum over the W lanes of each channel via the 0/1 matmul,
        # then reduce over rows.  Keeps everything 2-D and lane-resident.
        mean = jnp.sum(jnp.dot(y, rmat, preferred_element_type=f32),
                       axis=0, keepdims=True) * inv_cnt
        ex2 = jnp.sum(jnp.dot(y * y, rmat, preferred_element_type=f32),
                      axis=0, keepdims=True) * inv_cnt
        var = jnp.maximum(ex2 - mean * mean, 0.0)
        scale = gamma_rep * lax.rsqrt(var + eps)
        shift = beta_rep - mean * scale
        return jnp.maximum(y * scale + shift, 0.0)

    def build_lhs(ap, P, shifts, L):
        # ap: (N, H + 2P, L) planar activation with zeroed halo rows.
        pieces = [ap[:, P + sy:P + sy + H, :] for sy in shifts]
        return jnp.concatenate(pieces, axis=-1).reshape(N * H, len(shifts) * L)

    # -------------------------------- layer 1 --------------------------------
    P1 = max(abs(s) for s in shifts1)
    x4 = x_ref[...].astype(f32)                            # (N, Cin, H, W) NCHW
    # NCHW -> planar (lane = ci*W + w); this absorbs the wrapper-side transpose.
    x_planar = jnp.concatenate([x4[:, ci, :, :] for ci in range(Cin)], axis=-1)
    if P1 > 0:                                             # zero ONLY the halo rows
        ap1[:, :P1, :] = jnp.zeros((N, P1, Cin * W), f32)
        ap1[:, P1 + H:, :] = jnp.zeros((N, P1, Cin * W), f32)
    ap1[:, P1:P1 + H, :] = x_planar

    lhs1 = build_lhs(ap1, P1, shifts1, Cin * W)            # (N*H, S1*Cin*W)
    y1 = jnp.dot(lhs1, w1_ref[...], preferred_element_type=f32) + b1_ref[...]
    a1 = batchnorm_relu(y1, g1_ref[...], be1_ref[...])     # (N*H, Cout*W)

    # -------------------------------- layer 2 --------------------------------
    P2 = max(abs(s) for s in shifts2)
    if P2 > 0:
        ap2[:, :P2, :] = jnp.zeros((N, P2, Cout * W), f32)
        ap2[:, P2 + H:, :] = jnp.zeros((N, P2, Cout * W), f32)
    ap2[:, P2:P2 + H, :] = a1.reshape(N, H, Cout * W)

    lhs2 = build_lhs(ap2, P2, shifts2, Cout * W)           # (N*H, S2*Cout*W)
    y2 = jnp.dot(lhs2, w2_ref[...], preferred_element_type=f32) + b2_ref[...]
    out = batchnorm_relu(y2, g2_ref[...], be2_ref[...])    # (N*H, Cout*W)

    # ------------------ NCHW writeback (no wrapper transpose) ----------------
    chans = [out[:, co * W:(co + 1) * W].reshape(N, 1, H, W) for co in range(Cout)]
    o_ref[...] = jnp.concatenate(chans, axis=1)            # (N, Cout, H, W)


# ----------------------------------------------------------------------------
# Module builder: folds weights, prepares lane-repeated BN params, returns the
# forward callable (NCHW in -> NCHW out) backed by one pallas_call.
# ----------------------------------------------------------------------------
def build_deform_inconv(in_ch, out_ch, H, W,
                        w1, b1, pbias1, w2, b2, pbias2,
                        gamma1, beta1, gamma2, beta2, eps=1e-5):
    l1 = _build_layer(w1, b1, pbias1, W)
    l2 = _build_layer(w2, b2, pbias2, W)
    assert l1["Cin"] == in_ch and l1["Cout"] == out_ch
    assert l2["Cin"] == out_ch and l2["Cout"] == out_ch

    # 0/1 replication matrix for per-channel BN reductions (channel = lane // W).
    lanes = np.arange(out_ch * W)
    rmat = jnp.asarray((lanes[:, None] // W) == (lanes[None, :] // W), jnp.float32)

    def rep(v):                                            # per-lane repeat of a (C,) vector
        return jnp.asarray(np.repeat(np.asarray(v, np.float64), W)[None, :], jnp.float32)

    g1, be1, g2, be2 = rep(gamma1), rep(beta1), rep(gamma2), rep(beta2)

    P1 = max(abs(s) for s in l1["row_shifts"])
    P2 = max(abs(s) for s in l2["row_shifts"])
    vmem = pl.BlockSpec(memory_space=pltpu.MemorySpace.VMEM)

    def forward(x_nchw):
        N = x_nchw.shape[0]
        assert x_nchw.shape == (N, in_ch, H, W), x_nchw.shape
        kernel = functools.partial(
            _fused_kernel, N=N, H=H, W=W, Cin=in_ch, Cout=out_ch,
            shifts1=l1["row_shifts"], shifts2=l2["row_shifts"], eps=eps)
        return pl.pallas_call(
            kernel,
            out_shape=jax.ShapeDtypeStruct((N, out_ch, H, W), jnp.float32),
            in_specs=[vmem] * 10,
            out_specs=vmem,
            scratch_shapes=[
                pltpu.VMEM((N, H + 2 * P1, in_ch * W), jnp.float32),
                pltpu.VMEM((N, H + 2 * P2, out_ch * W), jnp.float32),
            ],
            compiler_params=pltpu.CompilerParams(
                vmem_limit_bytes=32 * 1024 * 1024),
        )(x_nchw.astype(jnp.float32),
          l1["w_cat"], l1["bias_rep"], g1, be1,
          l2["w_cat"], l2["bias_rep"], g2, be2, rmat)

    return forward


# ----------------------------------------------------------------------------
if __name__ == "__main__":
    in_ch, out_ch = 4, 8
    N, H, W = 2, 16, 16

    # Deterministic synthetic parameters, PyTorch-default-like scales.
    rng = np.random.default_rng(0)

    def conv_params(ci, co):
        bnd = 1.0 / math.sqrt(ci * 9)
        w = rng.uniform(-bnd, bnd, size=(co, ci, 3, 3))
        b = rng.uniform(-bnd, bnd, size=(co,))
        p_bias = rng.uniform(-bnd, bnd, size=(2 * 9,))     # p_conv bias (weight == 0)
        return w, b, p_bias

    w1, b1, pb1 = conv_params(in_ch, out_ch)
    w2, b2, pb2 = conv_params(out_ch, out_ch)
    gamma1 = np.ones((out_ch,), np.float32)
    beta1 = np.zeros((out_ch,), np.float32)
    gamma2 = np.ones((out_ch,), np.float32)
    beta2 = np.zeros((out_ch,), np.float32)

    fwd = build_deform_inconv(in_ch, out_ch, H, W,
                              w1, b1, pb1, w2, b2, pb2,
                              gamma1, beta1, gamma2, beta2)

    x = jax.random.normal(jax.random.PRNGKey(0), (N, in_ch, H, W), jnp.float32)
    out = jax.block_until_ready(fwd(x))

    assert out.shape == (N, out_ch, H, W), out.shape
    assert bool(jnp.all(jnp.isfinite(out)))
    assert bool(jnp.all(out >= 0.0))                       # ReLU epilogue
    print("KERNEL_OK")
</pallas_src>

<mosaic_0001>
module attributes {stable_mosaic.version = 11 : i64} {
  func.func @_fused_kernel(%arg0: memref<2x4x16x16xf32, #tpu.memory_space<vmem>>, %arg1: memref<320x128xf32, #tpu.memory_space<vmem>>, %arg2: memref<1x128xf32, #tpu.memory_space<vmem>>, %arg3: memref<1x128xf32, #tpu.memory_space<vmem>>, %arg4: memref<1x128xf32, #tpu.memory_space<vmem>>, %arg5: memref<512x128xf32, #tpu.memory_space<vmem>>, %arg6: memref<1x128xf32, #tpu.memory_space<vmem>>, %arg7: memref<1x128xf32, #tpu.memory_space<vmem>>, %arg8: memref<1x128xf32, #tpu.memory_space<vmem>>, %arg9: memref<128x128xf32, #tpu.memory_space<vmem>>, %arg10: memref<2x8x16x16xf32, #tpu.memory_space<vmem>>, %arg11: memref<2x20x64xf32, #tpu.memory_space<vmem>>, %arg12: memref<2x20x128xf32, #tpu.memory_space<vmem>>) attributes {dimension_semantics = [], scalar_prefetch = 0 : i64, scratch_operands = 2 : i64, tpu.core_type = #tpu.core_type<tc>} {
    %c0 = arith.constant 0 : index
    %c0_0 = arith.constant 0 : index
    %0 = vector.load %arg9[%c0, %c0_0] : memref<128x128xf32, #tpu.memory_space<vmem>>, vector<128x128xf32>
    %c0_1 = arith.constant 0 : index
    %c0_2 = arith.constant 0 : index
    %c0_3 = arith.constant 0 : index
    %c0_4 = arith.constant 0 : index
    %1 = vector.load %arg0[%c0_1, %c0_2, %c0_3, %c0_4] : memref<2x4x16x16xf32, #tpu.memory_space<vmem>>, vector<2x4x16x16xf32>
    %2 = vector.extract_strided_slice %1 {offsets = [0, 0, 0, 0], sizes = [2, 1, 16, 16], strides = [1, 1, 1, 1]} : vector<2x4x16x16xf32> to vector<2x1x16x16xf32>
    %3 = vector.shape_cast %2 : vector<2x1x16x16xf32> to vector<2x16x16xf32>
    %4 = vector.extract_strided_slice %1 {offsets = [0, 1, 0, 0], sizes = [2, 1, 16, 16], strides = [1, 1, 1, 1]} : vector<2x4x16x16xf32> to vector<2x1x16x16xf32>
    %5 = vector.shape_cast %4 : vector<2x1x16x16xf32> to vector<2x16x16xf32>
    %6 = vector.extract_strided_slice %1 {offsets = [0, 2, 0, 0], sizes = [2, 1, 16, 16], strides = [1, 1, 1, 1]} : vector<2x4x16x16xf32> to vector<2x1x16x16xf32>
    %7 = vector.shape_cast %6 : vector<2x1x16x16xf32> to vector<2x16x16xf32>
    %8 = vector.extract_strided_slice %1 {offsets = [0, 3, 0, 0], sizes = [2, 1, 16, 16], strides = [1, 1, 1, 1]} : vector<2x4x16x16xf32> to vector<2x1x16x16xf32>
    %9 = vector.shape_cast %8 : vector<2x1x16x16xf32> to vector<2x16x16xf32>
    %10 = tpu.concatenate %3, %5, %7, %9 in 2 : vector<2x16x16xf32>, vector<2x16x16xf32>, vector<2x16x16xf32>, vector<2x16x16xf32> -> vector<2x16x64xf32>
    %cst = arith.constant 0.000000e+00 : f32
    %11 = vector.broadcast %cst : f32 to vector<2x2x64xf32>
    %c0_5 = arith.constant 0 : index
    %c0_6 = arith.constant 0 : index
    %c0_7 = arith.constant 0 : index
    %12 = vector.load %arg11[%c0_5, %c0_6, %c0_7] : memref<2x20x64xf32, #tpu.memory_space<vmem>>, vector<2x2x64xf32>
    tpu.vector_store %arg11[%c0_5, %c0_6, %c0_7], %11 {strides = array<i32>} : memref<2x20x64xf32, #tpu.memory_space<vmem>>, vector<2x2x64xf32>,
    %cst_8 = arith.constant 0.000000e+00 : f32
    %13 = vector.broadcast %cst_8 : f32 to vector<2x2x64xf32>
    %c0_9 = arith.constant 0 : index
    %c18 = arith.constant 18 : index
    %c0_10 = arith.constant 0 : index
    %14 = vector.load %arg11[%c0_9, %c18, %c0_10] : memref<2x20x64xf32, #tpu.memory_space<vmem>>, vector<2x2x64xf32>
    tpu.vector_store %arg11[%c0_9, %c18, %c0_10], %13 {strides = array<i32>} : memref<2x20x64xf32, #tpu.memory_space<vmem>>, vector<2x2x64xf32>,
    %c0_11 = arith.constant 0 : index
    %c2 = arith.constant 2 : index
    %c0_12 = arith.constant 0 : index
    %15 = vector.load %arg11[%c0_11, %c2, %c0_12] : memref<2x20x64xf32, #tpu.memory_space<vmem>>, vector<2x16x64xf32>
    tpu.vector_store %arg11[%c0_11, %c2, %c0_12], %10 {strides = array<i32>} : memref<2x20x64xf32, #tpu.memory_space<vmem>>, vector<2x16x64xf32>,
    %c0_13 = arith.constant 0 : index
    %c0_14 = arith.constant 0 : index
    %c0_15 = arith.constant 0 : index
    %16 = vector.load %arg11[%c0_13, %c0_14, %c0_15] : memref<2x20x64xf32, #tpu.memory_space<vmem>>, vector<2x16x64xf32>
    %c0_16 = arith.constant 0 : index
    %c1 = arith.constant 1 : index
    %c0_17 = arith.constant 0 : index
    %17 = vector.load %arg11[%c0_16, %c1, %c0_17] : memref<2x20x64xf32, #tpu.memory_space<vmem>>, vector<2x16x64xf32>
    %c0_18 = arith.constant 0 : index
    %c2_19 = arith.constant 2 : index
    %c0_20 = arith.constant 0 : index
    %18 = vector.load %arg11[%c0_18, %c2_19, %c0_20] : memref<2x20x64xf32, #tpu.memory_space<vmem>>, vector<2x16x64xf32>
    %c0_21 = arith.constant 0 : index
    %c3 = arith.constant 3 : index
    %c0_22 = arith.constant 0 : index
    %19 = vector.load %arg11[%c0_21, %c3, %c0_22] : memref<2x20x64xf32, #tpu.memory_space<vmem>>, vector<2x16x64xf32>
    %c0_23 = arith.constant 0 : index
    %c4 = arith.constant 4 : index
    %c0_24 = arith.constant 0 : index
    %20 = vector.load %arg11[%c0_23, %c4, %c0_24] : memref<2x20x64xf32, #tpu.memory_space<vmem>>, vector<2x16x64xf32>
    %21 = tpu.concatenate %16, %17, %18, %19, %20 in 2 : vector<2x16x64xf32>, vector<2x16x64xf32>, vector<2x16x64xf32>, vector<2x16x64xf32>, vector<2x16x64xf32> -> vector<2x16x320xf32>
    %22 = vector.shape_cast %21 : vector<2x16x320xf32> to vector<32x320xf32>
    %c0_25 = arith.constant 0 : index
    %c0_26 = arith.constant 0 : index
    %23 = vector.load %arg1[%c0_25, %c0_26] : memref<320x128xf32, #tpu.memory_space<vmem>>, vector<320x128xf32>
    %cst_27 = arith.constant dense<0.000000e+00> : vector<32x128xf32>
    %24 = tpu.matmul %22, %23, %cst_27 {dimension_numbers = #tpu.dot_dimension_numbers<[1], [0], [0], [1], [0, 0, 1, 1], [], []>} : vector<32x320xf32>, vector<320x128xf32>, vector<32x128xf32> -> vector<32x128xf32>
    %c0_28 = arith.constant 0 : index
    %c0_29 = arith.constant 0 : index
    %25 = vector.load %arg2[%c0_28, %c0_29] : memref<1x128xf32, #tpu.memory_space<vmem>>, vector<1x128xf32>
    %26 = vector.broadcast %25 : vector<1x128xf32> to vector<32x128xf32>
    %27 = arith.addf %24, %26 : vector<32x128xf32>
    %c0_30 = arith.constant 0 : index
    %c0_31 = arith.constant 0 : index
    %28 = vector.load %arg3[%c0_30, %c0_31] : memref<1x128xf32, #tpu.memory_space<vmem>>, vector<1x128xf32>
    %c0_32 = arith.constant 0 : index
    %c0_33 = arith.constant 0 : index
    %29 = vector.load %arg4[%c0_32, %c0_33] : memref<1x128xf32, #tpu.memory_space<vmem>>, vector<1x128xf32>
    %cst_34 = arith.constant dense<0.000000e+00> : vector<32x128xf32>
    %30 = tpu.matmul %27, %0, %cst_34 {dimension_numbers = #tpu.dot_dimension_numbers<[1], [0], [0], [1], [0, 0, 1, 1], [], []>} : vector<32x128xf32>, vector<128x128xf32>, vector<32x128xf32> -> vector<32x128xf32>
    %cst_35 = arith.constant dense<0.000000e+00> : vector<128xf32>
    %31 = vector.multi_reduction <add>, %30, %cst_35 [0] : vector<32x128xf32> to vector<128xf32>
    %32 = vector.shape_cast %31 : vector<128xf32> to vector<1x128xf32>
    %cst_36 = arith.constant 0.001953125 : f32
    %33 = vector.broadcast %cst_36 : f32 to vector<1x128xf32>
    %34 = arith.mulf %32, %33 : vector<1x128xf32>
    %35 = arith.mulf %27, %27 : vector<32x128xf32>
    %cst_37 = arith.constant dense<0.000000e+00> : vector<32x128xf32>
    %36 = tpu.matmul %35, %0, %cst_37 {dimension_numbers = #tpu.dot_dimension_numbers<[1], [0], [0], [1], [0, 0, 1, 1], [], []>} : vector<32x128xf32>, vector<128x128xf32>, vector<32x128xf32> -> vector<32x128xf32>
    %cst_38 = arith.constant dense<0.000000e+00> : vector<128xf32>
    %37 = vector.multi_reduction <add>, %36, %cst_38 [0] : vector<32x128xf32> to vector<128xf32>
    %38 = vector.shape_cast %37 : vector<128xf32> to vector<1x128xf32>
    %cst_39 = arith.constant 0.001953125 : f32
    %39 = vector.broadcast %cst_39 : f32 to vector<1x128xf32>
    %40 = arith.mulf %38, %39 : vector<1x128xf32>
    %41 = arith.mulf %34, %34 : vector<1x128xf32>
    %42 = arith.subf %40, %41 : vector<1x128xf32>
    %cst_40 = arith.constant 0.000000e+00 : f32
    %43 = vector.broadcast %cst_40 : f32 to vector<1x128xf32>
    %44 = arith.maximumf %42, %43 : vector<1x128xf32>
    %cst_41 = arith.constant 9.99999974E-6 : f32
    %45 = vector.broadcast %cst_41 : f32 to vector<1x128xf32>
    %46 = arith.addf %44, %45 : vector<1x128xf32>
    %47 = math.rsqrt %46 : vector<1x128xf32>
    %48 = arith.mulf %28, %47 : vector<1x128xf32>
    %49 = arith.mulf %34, %48 : vector<1x128xf32>
    %50 = arith.subf %29, %49 : vector<1x128xf32>
    %51 = vector.broadcast %48 : vector<1x128xf32> to vector<32x128xf32>
    %52 = arith.mulf %27, %51 : vector<32x128xf32>
    %53 = vector.broadcast %50 : vector<1x128xf32> to vector<32x128xf32>
    %54 = arith.addf %52, %53 : vector<32x128xf32>
    %cst_42 = arith.constant 0.000000e+00 : f32
    %55 = vector.broadcast %cst_42 : f32 to vector<32x128xf32>
    %56 = arith.maximumf %54, %55 : vector<32x128xf32>
    %cst_43 = arith.constant 0.000000e+00 : f32
    %57 = vector.broadcast %cst_43 : f32 to vector<2x2x128xf32>
    %c0_44 = arith.constant 0 : index
    %c0_45 = arith.constant 0 : index
    %c0_46 = arith.constant 0 : index
    %58 = vector.load %arg12[%c0_44, %c0_45, %c0_46] : memref<2x20x128xf32, #tpu.memory_space<vmem>>, vector<2x2x128xf32>
    tpu.vector_store %arg12[%c0_44, %c0_45, %c0_46], %57 {strides = array<i32>} : memref<2x20x128xf32, #tpu.memory_space<vmem>>, vector<2x2x128xf32>,
    %cst_47 = arith.constant 0.000000e+00 : f32
    %59 = vector.broadcast %cst_47 : f32 to vector<2x2x128xf32>
    %c0_48 = arith.constant 0 : index
    %c18_49 = arith.constant 18 : index
    %c0_50 = arith.constant 0 : index
    %60 = vector.load %arg12[%c0_48, %c18_49, %c0_50] : memref<2x20x128xf32, #tpu.memory_space<vmem>>, vector<2x2x128xf32>
    tpu.vector_store %arg12[%c0_48, %c18_49, %c0_50], %59 {strides = array<i32>} : memref<2x20x128xf32, #tpu.memory_space<vmem>>, vector<2x2x128xf32>,
    %61 = vector.shape_cast %56 : vector<32x128xf32> to vector<2x16x128xf32>
    %c0_51 = arith.constant 0 : index
    %c2_52 = arith.constant 2 : index
    %c0_53 = arith.constant 0 : index
    %62 = vector.load %arg12[%c0_51, %c2_52, %c0_53] : memref<2x20x128xf32, #tpu.memory_space<vmem>>, vector<2x16x128xf32>
    tpu.vector_store %arg12[%c0_51, %c2_52, %c0_53], %61 {strides = array<i32>} : memref<2x20x128xf32, #tpu.memory_space<vmem>>, vector<2x16x128xf32>,
    %c0_54 = arith.constant 0 : index
    %c1_55 = arith.constant 1 : index
    %c0_56 = arith.constant 0 : index
    %63 = vector.load %arg12[%c0_54, %c1_55, %c0_56] : memref<2x20x128xf32, #tpu.memory_space<vmem>>, vector<2x16x128xf32>
    %c0_57 = arith.constant 0 : index
    %c2_58 = arith.constant 2 : index
    %c0_59 = arith.constant 0 : index
    %64 = vector.load %arg12[%c0_57, %c2_58, %c0_59] : memref<2x20x128xf32, #tpu.memory_space<vmem>>, vector<2x16x128xf32>
    %c0_60 = arith.constant 0 : index
    %c3_61 = arith.constant 3 : index
    %c0_62 = arith.constant 0 : index
    %65 = vector.load %arg12[%c0_60, %c3_61, %c0_62] : memref<2x20x128xf32, #tpu.memory_space<vmem>>, vector<2x16x128xf32>
    %c0_63 = arith.constant 0 : index
    %c4_64 = arith.constant 4 : index
    %c0_65 = arith.constant 0 : index
    %66 = vector.load %arg12[%c0_63, %c4_64, %c0_65] : memref<2x20x128xf32, #tpu.memory_space<vmem>>, vector<2x16x128xf32>
    %67 = tpu.concatenate %63, %64, %65, %66 in 2 : vector<2x16x128xf32>, vector<2x16x128xf32>, vector<2x16x128xf32>, vector<2x16x128xf32> -> vector<2x16x512xf32>
    %68 = vector.shape_cast %67 : vector<2x16x512xf32> to vector<32x512xf32>
    %c0_66 = arith.constant 0 : index
    %c0_67 = arith.constant 0 : index
    %69 = vector.load %arg5[%c0_66, %c0_67] : memref<512x128xf32, #tpu.memory_space<vmem>>, vector<512x128xf32>
    %cst_68 = arith.constant dense<0.000000e+00> : vector<32x128xf32>
    %70 = tpu.matmul %68, %69, %cst_68 {dimension_numbers = #tpu.dot_dimension_numbers<[1], [0], [0], [1], [0, 0, 1, 1], [], []>} : vector<32x512xf32>, vector<512x128xf32>, vector<32x128xf32> -> vector<32x128xf32>
    %c0_69 = arith.constant 0 : index
    %c0_70 = arith.constant 0 : index
    %71 = vector.load %arg6[%c0_69, %c0_70] : memref<1x128xf32, #tpu.memory_space<vmem>>, vector<1x128xf32>
    %72 = vector.broadcast %71 : vector<1x128xf32> to vector<32x128xf32>
    %73 = arith.addf %70, %72 : vector<32x128xf32>
    %c0_71 = arith.constant 0 : index
    %c0_72 = arith.constant 0 : index
    %74 = vector.load %arg7[%c0_71, %c0_72] : memref<1x128xf32, #tpu.memory_space<vmem>>, vector<1x128xf32>
    %c0_73 = arith.constant 0 : index
    %c0_74 = arith.constant 0 : index
    %75 = vector.load %arg8[%c0_73, %c0_74] : memref<1x128xf32, #tpu.memory_space<vmem>>, vector<1x128xf32>
    %cst_75 = arith.constant dense<0.000000e+00> : vector<32x128xf32>
    %76 = tpu.matmul %73, %0, %cst_75 {dimension_numbers = #tpu.dot_dimension_numbers<[1], [0], [0], [1], [0, 0, 1, 1], [], []>} : vector<32x128xf32>, vector<128x128xf32>, vector<32x128xf32> -> vector<32x128xf32>
    %cst_76 = arith.constant dense<0.000000e+00> : vector<128xf32>
    %77 = vector.multi_reduction <add>, %76, %cst_76 [0] : vector<32x128xf32> to vector<128xf32>
    %78 = vector.shape_cast %77 : vector<128xf32> to vector<1x128xf32>
    %cst_77 = arith.constant 0.001953125 : f32
    %79 = vector.broadcast %cst_77 : f32 to vector<1x128xf32>
    %80 = arith.mulf %78, %79 : vector<1x128xf32>
    %81 = arith.mulf %73, %73 : vector<32x128xf32>
    %cst_78 = arith.constant dense<0.000000e+00> : vector<32x128xf32>
    %82 = tpu.matmul %81, %0, %cst_78 {dimension_numbers = #tpu.dot_dimension_numbers<[1], [0], [0], [1], [0, 0, 1, 1], [], []>} : vector<32x128xf32>, vector<128x128xf32>, vector<32x128xf32> -> vector<32x128xf32>
    %cst_79 = arith.constant dense<0.000000e+00> : vector<128xf32>
    %83 = vector.multi_reduction <add>, %82, %cst_79 [0] : vector<32x128xf32> to vector<128xf32>
    %84 = vector.shape_cast %83 : vector<128xf32> to vector<1x128xf32>
    %cst_80 = arith.constant 0.001953125 : f32
    %85 = vector.broadcast %cst_80 : f32 to vector<1x128xf32>
    %86 = arith.mulf %84, %85 : vector<1x128xf32>
    %87 = arith.mulf %80, %80 : vector<1x128xf32>
    %88 = arith.subf %86, %87 : vector<1x128xf32>
    %cst_81 = arith.constant 0.000000e+00 : f32
    %89 = vector.broadcast %cst_81 : f32 to vector<1x128xf32>
    %90 = arith.maximumf %88, %89 : vector<1x128xf32>
    %cst_82 = arith.constant 9.99999974E-6 : f32
    %91 = vector.broadcast %cst_82 : f32 to vector<1x128xf32>
    %92 = arith.addf %90, %91 : vector<1x128xf32>
    %93 = math.rsqrt %92 : vector<1x128xf32>
    %94 = arith.mulf %74, %93 : vector<1x128xf32>
    %95 = arith.mulf %80, %94 : vector<1x128xf32>
    %96 = arith.subf %75, %95 : vector<1x128xf32>
    %97 = vector.broadcast %94 : vector<1x128xf32> to vector<32x128xf32>
    %98 = arith.mulf %73, %97 : vector<32x128xf32>
    %99 = vector.broadcast %96 : vector<1x128xf32> to vector<32x128xf32>
    %100 = arith.addf %98, %99 : vector<32x128xf32>
    %cst_83 = arith.constant 0.000000e+00 : f32
    %101 = vector.broadcast %cst_83 : f32 to vector<32x128xf32>
    %102 = arith.maximumf %100, %101 : vector<32x128xf32>
    %103 = vector.extract_strided_slice %102 {offsets = [0, 0], sizes = [32, 16], strides = [1, 1]} : vector<32x128xf32> to vector<32x16xf32>
    %104 = vector.shape_cast %103 : vector<32x16xf32> to vector<2x1x16x16xf32>
    %105 = vector.extract_strided_slice %102 {offsets = [0, 16], sizes = [32, 16], strides = [1, 1]} : vector<32x128xf32> to vector<32x16xf32>
    %106 = vector.shape_cast %105 : vector<32x16xf32> to vector<2x1x16x16xf32>
    %107 = vector.extract_strided_slice %102 {offsets = [0, 32], sizes = [32, 16], strides = [1, 1]} : vector<32x128xf32> to vector<32x16xf32>
    %108 = vector.shape_cast %107 : vector<32x16xf32> to vector<2x1x16x16xf32>
    %109 = vector.extract_strided_slice %102 {offsets = [0, 48], sizes = [32, 16], strides = [1, 1]} : vector<32x128xf32> to vector<32x16xf32>
    %110 = vector.shape_cast %109 : vector<32x16xf32> to vector<2x1x16x16xf32>
    %111 = vector.extract_strided_slice %102 {offsets = [0, 64], sizes = [32, 16], strides = [1, 1]} : vector<32x128xf32> to vector<32x16xf32>
    %112 = vector.shape_cast %111 : vector<32x16xf32> to vector<2x1x16x16xf32>
    %113 = vector.extract_strided_slice %102 {offsets = [0, 80], sizes = [32, 16], strides = [1, 1]} : vector<32x128xf32> to vector<32x16xf32>
    %114 = vector.shape_cast %113 : vector<32x16xf32> to vector<2x1x16x16xf32>
    %115 = vector.extract_strided_slice %102 {offsets = [0, 96], sizes = [32, 16], strides = [1, 1]} : vector<32x128xf32> to vector<32x16xf32>
    %116 = vector.shape_cast %115 : vector<32x16xf32> to vector<2x1x16x16xf32>
    %117 = vector.extract_strided_slice %102 {offsets = [0, 112], sizes = [32, 16], strides = [1, 1]} : vector<32x128xf32> to vector<32x16xf32>
    %118 = vector.shape_cast %117 : vector<32x16xf32> to vector<2x1x16x16xf32>
    %119 = tpu.concatenate %104, %106, %108, %110, %112, %114, %116, %118 in 1 : vector<2x1x16x16xf32>, vector<2x1x16x16xf32>, vector<2x1x16x16xf32>, vector<2x1x16x16xf32>, vector<2x1x16x16xf32>, vector<2x1x16x16xf32>, vector<2x1x16x16xf32>, vector<2x1x16x16xf32> -> vector<2x8x16x16xf32>
    %c0_84 = arith.constant 0 : index
    %c0_85 = arith.constant 0 : index
    %c0_86 = arith.constant 0 : index
    %c0_87 = arith.constant 0 : index
    %120 = vector.load %arg10[%c0_84, %c0_85, %c0_86, %c0_87] : memref<2x8x16x16xf32, #tpu.memory_space<vmem>>, vector<2x8x16x16xf32>
    tpu.vector_store %arg10[%c0_84, %c0_85, %c0_86, %c0_87], %119 {strides = array<i32>} : memref<2x8x16x16xf32, #tpu.memory_space<vmem>>, vector<2x8x16x16xf32>,
    return
  }
}

</mosaic_0001>

<bundles_post_ra>
// kernel: tpu_custom_call.1
= control target key start
LH: loop header
LB: loop body
LE: loop exit
PB: predicated region body
PF: predicated region fallthrough
CT: control target
= control target key end

     0   :  { %15 = vsyncpa [#allocation5], 0  ;;  %s1557_s0 = inlined_call_operand.hbm [shape: f32[2,4,16,16], index: 0, kind: input, shape index: {}]   ;;  %s1558_s1 = inlined_call_operand.hbm [shape: f32[320,128], index: 1, kind: input, shape index: {}]   ;;  %s1559_s2 = inlined_call_operand.vmem [shape: f32[1,128], index: 2, kind: input, shape index: {}]   ;;  %s1560_s3 = inlined_call_operand.vmem [shape: f32[1,128], index: 3, kind: input, shape index: {}]   ;;  %s1561_s4 = inlined_call_operand.vmem [shape: f32[1,128], index: 4, kind: input, shape index: {}]   ;;  %s1562_s5 = inlined_call_operand.hbm [shape: f32[512,128], index: 5, kind: input, shape index: {}]   ;;  %s1563_s6 = inlined_call_operand.vmem [shape: f32[1,128], index: 6, kind: input, shape index: {}]   ;;  %s1564_s7 = inlined_call_operand.vmem [shape: f32[1,128], index: 7, kind: input, shape index: {}]   ;;  %s1565_s8 = inlined_call_operand.vmem [shape: f32[1,128], index: 8, kind: input, shape index: {}]   ;;  %s1566_s9 = inlined_call_operand.hbm [shape: f32[128,128], index: 9, kind: input, shape index: {}]   ;;  %s1567_s10 = inlined_call_operand.hbm [shape: f32[2,8,16,16], index: 10, kind: output, shape index: {}]  }
   0x1   :  { %16 = vsyncpa [#allocation8], 0 }
   0x2   :  { %17 = vsyncpa [#allocation11], 0 }
   0x3   :  { %18 = vsyncpa [#allocation6], 0  ;;  %s36_s15 = sshll.u32 %s1558_s1, 4  ;;  %s1183_s16 = smov [#allocation7]   ;;  %s37_s15 = int_to_ptr.hbm [resolvable:$true] %s36_s15 }
   0x4   :  { %s38_s17 = sshll.u32 %s1183_s16, 4  ;;  %s23_s20 = sshll.u32 %s1557_s0, 4  ;;  %s39_s17 = int_to_ptr.vmem [resolvable:$true] %s38_s17  ;;  %s24_s20 = int_to_ptr.hbm [resolvable:$true] %s23_s20 }
   0x5   :  { %s1184_s21 = smov 128   ;;  %s1185_s22 = smov 8  }
   0x6   :  { %44 = dma.hbm_to_vmem [thread:$0]  %s37_s15, 5120, %s39_s17, [#allocation8], %s1184_s21, %s1184_s21, %s1185_s22  }
   0x7   :  { %s1186_s23 = smov [#allocation4]   ;;  %s55_s1 = sshll.u32 %s1562_s5, 4  ;;  %s56_s1 = int_to_ptr.hbm [resolvable:$true] %s55_s1 }
   0x8   :  { %s25_s24 = sshll.u32 %s1186_s23, 4  ;;  %s74_s28 = sshll.u32 %s1566_s9, 4  ;;  %s26_s24 = int_to_ptr.vmem [resolvable:$true] %s25_s24  ;;  %s75_s28 = int_to_ptr.hbm [resolvable:$true] %s74_s28 }
   0x9   :  { %31 = dma.hbm_to_vmem [thread:$0]  %s24_s20, 2048, %s26_s24, [#allocation5], %s1184_s21, %s1184_s21, %s1185_s22  }
   0xa   :  { %s1187_s29 = smov [#allocation9]   ;;  %s1188_s11 = smov [#allocation10]  }
   0xb   :  { %s57_s30 = sshll.u32 %s1187_s29, 4  ;;  %s76_s5 = sshll.u32 %s1188_s11, 4  ;;  %s58_s30 = int_to_ptr.vmem [resolvable:$true] %s57_s30  ;;  %s77_s5 = int_to_ptr.vmem [resolvable:$true] %s76_s5 }
   0xc   :  { %63 = dma.hbm_to_vmem [thread:$0]  %s56_s1, 8192, %s58_s30, [#allocation8], %s1184_s21, %s1184_s21, %s1185_s22  }
   0xd   :  { %82 = dma.hbm_to_vmem [thread:$0]  %s75_s28, 2048, %s77_s5, [#allocation11], %s1184_s21, %s1184_s21, %s1185_s22  }
   0xe   :  { %1175 = dma.done.wait [#allocation5], 2048  }
   0xf   :  { %1176 = vsyncadd [#allocation5], 4294965248 }
  0x10   :  { %1177 = dma.done.wait [#allocation8], 13312  }
  0x11   :  { %1178 = vsyncadd [#allocation8], 4294953984 }
  0x12   :  { %1179 = dma.done.wait [#allocation11], 2048  }
  0x13   :  { %1180 = vsyncadd [#allocation11], 4294965248  ;;  %v118_v0 = vld [vmem:[#allocation4 + $0x18] sm:$0xff]  ;;  %v117_v1 = vld [vmem:[#allocation4 + $0x10] sm:$0xff]  ;;  %s1189_s9 = smov 16   ;;  %s1190_s12 = smov 32  }
  0x14   :  { %137 = vrot.lane.b32.xlu1 %v118_v0, %s1189_s9  ;;  %135 = vrot.lane.b32.xlu0 %v117_v1, %s1189_s9  ;;  %v120_v2 = vld [vmem:[#allocation4 + $0x28] sm:$0xff]  ;;  %v121_v3 = vld [vmem:[#allocation4 + $0x30] sm:$0xff]  ;;  %v119_v4 = vld [vmem:[#allocation4 + $0x20] sm:$0xff]  ;;  %s1191_s13 = smov 48   ;;  %vm194_vm0 = vcmask 517120   ;;  %v1192_v14 = vmov 0.0  }
  0x15   :  { %153 = vrot.lane.b32.xlu2 %v120_v2, %s1190_s12  ;;  %v122_v5 = vld [vmem:[#allocation4 + $0x38] sm:$0xff]  ;;  %v127_v6 = vld [vmem:[#allocation4 + $0x60] sm:$0xff]  ;;  %v125_v7 = vld [vmem:[#allocation4 + $0x50] sm:$0xff]  ;;  %197 = vst.msk [vmem:[#allocation2 + $0x12] sm:$0x3] %vm194_vm0, %v1192_v14  ;;  %vm179_vm1 = vcmask 130048  }
  0x16   :  { %v126_v8 = vld [vmem:[#allocation4 + $0x58] sm:$0xff]  ;;  %v128_v9 = vld [vmem:[#allocation4 + $0x68] sm:$0xff]  ;;  %v129_v10 = vld [vmem:[#allocation4 + $0x70] sm:$0xff]  ;;  %195 = vst.msk [vmem:[#allocation2] sm:$0x3] %vm194_vm0, %v1192_v14  ;;  %vm184_vm2 = vcmask 261120  }
  0x17   :  { %v130_v11 = vld [vmem:[#allocation4 + $0x78] sm:$0xff]  ;;  %v302_v13 = vld [vmem:[#allocation7 + $0x130] sm:$0xff]  ;;  %v301_v15 = vld [vmem:[#allocation7 + $0x128] sm:$0xff]  ;;  %196 = vst.msk [vmem:[#allocation2 + $0x18] sm:$0x3] %vm194_vm0, %v1192_v14  ;;  %vm189_vm3 = vcmask 392192  }
  0x18   :  { %v303_v12 = vld [vmem:[#allocation7 + $0x138] sm:$0xff]  ;;  %198 = vst.msk [vmem:[#allocation2 + $0x2a] sm:$0x3] %vm194_vm0, %v1192_v14  ;;  %v300_v16 = vld [vmem:[#allocation7 + $0x120] sm:$0xff]  ;;  %v298_v18 = vld [vmem:[#allocation7 + $0x110] sm:$0xff]  ;;  %vm199_vm4 = vcmask 523264  }
  0x19   :  { %386 = vmatpush.msra.mxu2 %v303_v12  ;;  %526 = vst [vmem:[#allocation3] sm:$0x3] %v1192_v14  ;;  %v299_v17 = vld [vmem:[#allocation7 + $0x118] sm:$0xff]  ;;  %v297_v19 = vld [vmem:[#allocation7 + $0x108] sm:$0xff]  ;;  %v296_v20 = vld [vmem:[#allocation7 + $0x100] sm:$0xff]  ;;  %s1193_s14 = smov 64  }
  0x1a   :  { %527 = vst [vmem:[#allocation3 + $0x18] sm:$0x3] %v1192_v14  ;;  %v116_v22 = vld [vmem:[#allocation4 + $0x8] sm:$0xff]  ;;  %v115_v29 = vld [vmem:[#allocation4] sm:$0xff]  ;;  %v279_v35 = vld [vmem:[#allocation7 + $0x78] sm:$0xff]  ;;  %s1196_s25 = smov 80  }
  0x1b   :  { %387 = vmatpush.msra.mxu2 %v302_v13  ;;  %528 = vst [vmem:[#allocation3 + $0x12] sm:$0x3] %v1192_v14  ;;  %320 = vmatpush.msra.mxu0 %v279_v35  ;;  %v295_v36 = vld [vmem:[#allocation7 + $0xf8] sm:$0xff]  ;;  %v278_v37 = vld [vmem:[#allocation7 + $0x70] sm:$0xff]  ;;  %v277_v40 = vld [vmem:[#allocation7 + $0x68] sm:$0xff]  ;;  %s1197_s26 = smov [#allocation12]  }
  0x1c   :  { %167 = vrot.lane.b32.xlu1 %v121_v3, %s1191_s13  ;;  %151 = vrot.lane.b32.xlu0 %v119_v4, %s1190_s12  ;;  %529 = vst [vmem:[#allocation3 + $0x2a] sm:$0x3] %v1192_v14  ;;  %v294_v38 = vld [vmem:[#allocation7 + $0xf0] sm:$0xff]  ;;  %v293_v41 = vld [vmem:[#allocation7 + $0xe8] sm:$0xff]  ;;  %v276_v42 = vld [vmem:[#allocation7 + $0x60] sm:$0xff]  ;;  %s977_s1 = sshll.u32 %s1197_s26, 4  ;;  %s978_s1 = int_to_ptr.vmem [resolvable:$true] %s977_s1 }
  0x1d   :  { %169 = vrot.lane.b32.xlu2 %v122_v5, %s1191_s13  ;;  %388 = vmatpush.msra.mxu2 %v301_v15  ;;  %v123_v44 = vld [vmem:[#allocation4 + $0x40] sm:$0xff]  ;;  %v275_v48 = vld [vmem:[#allocation7 + $0x58] sm:$0xff]  ;;  %v124_v53 = vld [vmem:[#allocation4 + $0x48] sm:$0xff]  ;;  %s979_s28 = sshll.u32 %s1567_s10, 4  ;;  %s980_s28 = int_to_ptr.hbm [resolvable:$true] %s979_s28 }
  0x1e   :  { %349 = vmatpush.msra.mxu1 %v295_v36  ;;  %321 = vmatpush.msra.mxu0 %v278_v37  ;;  %v292_v46 = vld [vmem:[#allocation7 + $0xe0] sm:$0xff]  ;;  %v291_v49 = vld [vmem:[#allocation7 + $0xd8] sm:$0xff]  ;;  %v274_v57 = vld [vmem:[#allocation7 + $0x50] sm:$0xff] }
  0x1f   :  { %389 = vmatpush.msra.mxu2 %v300_v16  ;;  %v290_v59 = vld [vmem:[#allocation7 + $0xd0] sm:$0xff]  ;;  %v273_v60 = vld [vmem:[#allocation7 + $0x48] sm:$0xff]  ;;  %v272_v1 = vld [vmem:[#allocation7 + $0x40] sm:$0xff] }
  0x20   :  { %350 = vmatpush.msra.mxu1 %v294_v38  ;;  %322 = vmatpush.msra.mxu0 %v277_v40  ;;  %v289_v63 = vld [vmem:[#allocation7 + $0xc8] sm:$0xff]  ;;  %v288_v4 = vld [vmem:[#allocation7 + $0xc0] sm:$0xff]  ;;  %v286_v12 = vld [vmem:[#allocation7 + $0xb0] sm:$0xff] }
  0x21   :  { %390 = vmatpush.msra.mxu2 %v299_v17 }
  0x22   :  { %351 = vmatpush.msra.mxu1 %v293_v41  ;;  %323 = vmatpush.msra.mxu0 %v276_v42  ;;  %v1315_v41 = vld [vmem:[#allocation10 + $0x78] sm:$0xff]  ;;  %v1317_v42 = vld [vmem:[#allocation10 + $0x70] sm:$0xff] }
  0x23   :  { %391 = vmatpush.msra.mxu2 %v298_v18  ;;  %409 = vmatpush.msra.mxu3 %v1315_v41 }
  0x24   :  { %155 = vrot.lane.b32.xlu1 %v127_v6, %s1190_s12  ;;  %139 = vrot.lane.b32.xlu0 %v125_v7, %s1189_s9  ;;  %v271_v7 = vld [vmem:[#allocation7 + $0x38] sm:$0xff] }
  0x25   :  { %141 = vrot.lane.b32.xlu2 %v126_v8, %s1189_s9  ;;  %392 = vmatpush.msra.mxu2 %v297_v19 }
  0x26   :  { %352 = vmatpush.msra.mxu1 %v292_v46  ;;  %324 = vmatpush.msra.mxu0 %v275_v48  ;;  %v1325_v48 = vld [vmem:[#allocation10 + $0x60] sm:$0xff] }
  0x27   :  { %393 = vmatpush.msra.mxu2 %v296_v20  ;;  %410 = vmatpush.msra.mxu3 %v1317_v42 }
  0x28   :  { %353 = vmatpush.msra.mxu1 %v291_v49  ;;  %325 = vmatpush.msra.mxu0 %v274_v57 }
  0x29   :  { %452 = vmatpush.msrb.mxu2 %v1315_v41 }
  0x2a   :  { %354 = vmatpush.msra.mxu1 %v290_v59  ;;  %326 = vmatpush.msra.mxu0 %v273_v60  ;;  %v1343_v59 = vld [vmem:[#allocation10 + $0x40] sm:$0xff] }
  0x2b   :  { %453 = vmatpush.msrb.mxu2 %v1317_v42 }
  0x2c   :  { %157 = vrot.lane.b32.xlu1 %v128_v9, %s1190_s12  ;;  %171 = vrot.lane.b32.xlu0 %v129_v10, %s1191_s13  ;;  %v287_v10 = vld [vmem:[#allocation7 + $0xb8] sm:$0xff] }
  0x2d   :  { %173 = vrot.lane.b32.xlu2 %v130_v11, %s1191_s13  ;;  %355 = vmatpush.msra.mxu1 %v289_v63  ;;  %v270_v11 = vld [vmem:[#allocation7 + $0x30] sm:$0xff]  ;;  %v1349_v63 = vld [vmem:[#allocation10 + $0x38] sm:$0xff] }
  0x2e   :  { %327 = vmatpush.msra.mxu0 %v272_v1 }
  0x2f   :  { %356 = vmatpush.msra.mxu1 %v288_v4 }
  0x30   :  { %328 = vmatpush.msra.mxu0 %v271_v7 }
  0x31   :  { %357 = vmatpush.msra.mxu1 %v287_v10  ;;  %v1371_v10 = vld [vmem:[#allocation10 + $0x10] sm:$0xff] }
  0x32   :  { %329 = vmatpush.msra.mxu0 %v270_v11  ;;  %v1375_v11 = vld [vmem:[#allocation10 + $0x8] sm:$0xff] }
  0x33   :  { %358 = vmatpush.msra.mxu1 %v286_v12  ;;  %v1379_v12 = vld [vmem:[#allocation10] sm:$0xff] }
  0x6f   :  { %v154_v21 = vpop.permute.xlu2 %153 }
  0x77   :  { %v170_v23 = vpop.permute.xlu2 %169 }
  0x7f   :  { %v142_v39 = vpop.permute.xlu2 %141 }
  0x80   :  { %v183_v61 = vsel %vm179_vm1, %v124_v53, %v142_v39  ;;  %v1335_v53 = vld [vmem:[#allocation10 + $0x50] sm:$0xff] }
  0x86   :  { %v138_v24 = vpop.permute.xlu1 %137  ;;  %v136_v25 = vpop.permute.xlu0 %135 }
  0x87   :  { %v181_v26 = vsel %vm179_vm1, %v116_v22, %v138_v24  ;;  %v180_v30 = vsel %vm179_vm1, %v115_v29, %v136_v25  ;;  %v174_v0 = vpop.permute.xlu2 %173  ;;  %v285_v22 = vld [vmem:[#allocation7 + $0xa8] sm:$0xff]  ;;  %v284_v24 = vld [vmem:[#allocation7 + $0xa0] sm:$0xff]  ;;  %v267_v25 = vld [vmem:[#allocation7 + $0x18] sm:$0xff] }
  0x88   :  { %v186_v27 = vsel %vm184_vm2, %v181_v26, %v154_v21  ;;  %v269_v21 = vld [vmem:[#allocation7 + $0x28] sm:$0xff]  ;;  %359 = vmatpush.msra.mxu1 %v285_v22  ;;  %v283_v26 = vld [vmem:[#allocation7 + $0x98] sm:$0xff] }
  0x89   :  { %v191_v28 = vsel %vm189_vm3, %v186_v27, %v170_v23  ;;  %v268_v23 = vld [vmem:[#allocation7 + $0x20] sm:$0xff]  ;;  %330 = vmatpush.msra.mxu0 %v269_v21  ;;  %v266_v27 = vld [vmem:[#allocation7 + $0x10] sm:$0xff]  ;;  %v265_v29 = vld [vmem:[#allocation7 + $0x8] sm:$0xff] }
  0x8a   :  { %201 = vst.msk [vmem:[#allocation2 + $0xa] sm:$0xff] %vm199_vm4, %v191_v28  ;;  %360 = vmatpush.msra.mxu1 %v284_v24  ;;  %v282_v28 = vld [vmem:[#allocation7 + $0x90] sm:$0xff] }
  0x8b   :  { %331 = vmatpush.msra.mxu0 %v268_v23 }
  0x8c   :  { %361 = vmatpush.msra.mxu1 %v283_v26 }
  0x8d   :  { %332 = vmatpush.msra.mxu0 %v267_v25 }
  0x8e   :  { %v168_v31 = vpop.permute.xlu1 %167  ;;  %v152_v32 = vpop.permute.xlu0 %151  ;;  %362 = vmatpush.msra.mxu1 %v282_v28 }
  0x8f   :  { %v185_v33 = vsel %vm184_vm2, %v180_v30, %v152_v32  ;;  %333 = vmatpush.msra.mxu0 %v266_v27  ;;  %v281_v30 = vld [vmem:[#allocation7 + $0x88] sm:$0xff]  ;;  %v280_v32 = vld [vmem:[#allocation7 + $0x80] sm:$0xff] }
  0x90   :  { %v190_v34 = vsel %vm189_vm3, %v185_v33, %v168_v31  ;;  %363 = vmatpush.msra.mxu1 %v281_v30  ;;  %v264_v31 = vld [vmem:[#allocation7] sm:$0xff] }
  0x91   :  { %200 = vst.msk [vmem:[#allocation2 + $0x2] sm:$0xff] %vm199_vm4, %v190_v34  ;;  %v217_v47 = vld [vmem:[#allocation2 + $0xb] sm:$0xff]  ;;  %334 = vmatpush.msra.mxu0 %v265_v29 }
  0x92   :  { %v221_v9 = vld [vmem:[#allocation2 + $0xc] sm:$0xff]  ;;  %364 = vmatpush.msra.mxu1 %v280_v32 }
  0x93   :  { %335 = vmatpush.msra.mxu0 %v264_v31 }
  0x96   :  { %v156_v43 = vpop.permute.xlu1 %155  ;;  %v140_v45 = vpop.permute.xlu0 %139 }
  0x97   :  { %v182_v54 = vsel %vm179_vm1, %v123_v44, %v140_v45  ;;  %v1321_v45 = vld [vmem:[#allocation10 + $0x68] sm:$0xff] }
  0x98   :  { %v220_v50 = vld [vmem:[#allocation2 + $0x4] sm:$0xff]  ;;  %v187_v62 = vsel %vm184_vm2, %v182_v54, %v156_v43  ;;  %411 = vmatpush.msra.mxu3 %v1321_v45  ;;  %454 = vmatpush.msrb.mxu2 %v1321_v45 }
  0x99   :  { %v209_v51 = vld [vmem:[#allocation2 + $0x9] sm:$0xff]  ;;  %v208_v52 = vld [vmem:[#allocation2 + $0x1] sm:$0xff]  ;;  %994 = vmatmul.msk.f32.vlgmr.msra.gmra.mxu2 %vm199_vm4, %v220_v50 }
  0x9a   :  { %v1034_v55 = vpack.i.bf16 %v217_v47, %v209_v51  ;;  %v216_v56 = vld [vmem:[#allocation2 + $0x3] sm:$0xff]  ;;  %412 = vmatpush.msra.mxu3 %v1325_v48  ;;  %455 = vmatpush.msrb.mxu2 %v1325_v48 }
  0x9b   :  { %v1029_v58 = vpack.i.bf16 %v216_v56, %v208_v52  ;;  %v204_v36 = vld [vmem:[#allocation2] sm:$0xff]  ;;  %v205_v46 = vld [vmem:[#allocation2 + $0x8] sm:$0xff]  ;;  %v1331_v52 = vld [vmem:[#allocation10 + $0x58] sm:$0xff] }
  0x9c   :  { %1035 = vrot.lane.b32.xlu1 %v1034_v55, %s1193_s14  ;;  %v212_v37 = vld [vmem:[#allocation2 + $0x2] sm:$0xff]  ;;  %v213_v47 = vld [vmem:[#allocation2 + $0xa] sm:$0xff]  ;;  %413 = vmatpush.msra.mxu3 %v1331_v52 }
  0x9d   :  { %1030 = vrot.lane.b32.xlu0 %v1029_v58, %s1193_s14  ;;  %456 = vmatpush.msrb.mxu2 %v1331_v52  ;;  %v1339_v56 = vld [vmem:[#allocation10 + $0x48] sm:$0xff] }
  0x9e   :  { %v158_v2 = vpop.permute.xlu1 %157  ;;  %v172_v3 = vpop.permute.xlu0 %171  ;;  %414 = vmatpush.msra.mxu3 %v1335_v53 }
  0x9f   :  { %v188_v5 = vsel %vm184_vm2, %v183_v61, %v158_v2  ;;  %v192_v6 = vsel %vm189_vm3, %v187_v62, %v172_v3  ;;  %457 = vmatpush.msrb.mxu2 %v1335_v53  ;;  %v1357_v3 = vld [vmem:[#allocation10 + $0x28] sm:$0xff] }
  0xa0   :  { %v193_v8 = vsel %vm189_vm3, %v188_v5, %v174_v0  ;;  %202 = vst.msk [vmem:[#allocation2 + $0x1a] sm:$0xff] %vm199_vm4, %v192_v6  ;;  %415 = vmatpush.msra.mxu3 %v1339_v56  ;;  %v1353_v0 = vld [vmem:[#allocation10 + $0x30] sm:$0xff]  ;;  %v1361_v6 = vld [vmem:[#allocation10 + $0x20] sm:$0xff] }
  0xa1   :  { %203 = vst.msk [vmem:[#allocation2 + $0x22] sm:$0xff] %vm199_vm4, %v193_v8  ;;  %995 = vmatmul.msk.f32.gmra.mxu2 %vm199_vm4, %v221_v9  ;;  %v1369_v9 = vld [vmem:[#allocation10 + $0x18] sm:$0xff] }
  0xa2   :  { %458 = vmatpush.msrb.mxu2 %v1339_v56  ;;  %416 = vmatpush.msra.mxu3 %v1343_v59 }
  0xa4   :  { %459 = vmatpush.msrb.mxu2 %v1343_v59  ;;  %417 = vmatpush.msra.mxu3 %v1349_v63 }
  0xa6   :  { %460 = vmatpush.msrb.mxu2 %v1349_v63  ;;  %418 = vmatpush.msra.mxu3 %v1353_v0 }
  0xa7   :  { %v210_v13 = vld [vmem:[#allocation2 + $0x19] sm:$0xff] }
  0xa8   :  { %v222_v14 = vld [vmem:[#allocation2 + $0x1c] sm:$0xff]  ;;  %v223_v20 = vld [vmem:[#allocation2 + $0x24] sm:$0xff]  ;;  %461 = vmatpush.msrb.mxu2 %v1353_v0  ;;  %419 = vmatpush.msra.mxu3 %v1357_v3 }
  0xa9   :  { %v218_v15 = vld [vmem:[#allocation2 + $0x1b] sm:$0xff]  ;;  %996 = vmatmul.msk.f32.gmra.mxu2 %vm199_vm4, %v222_v14  ;;  %v219_v18 = vld [vmem:[#allocation2 + $0x23] sm:$0xff] }
  0xaa   :  { %v211_v16 = vld [vmem:[#allocation2 + $0x21] sm:$0xff]  ;;  %v1039_v17 = vpack.i.bf16 %v218_v15, %v210_v13  ;;  %v206_v57 = vld [vmem:[#allocation2 + $0x18] sm:$0xff]  ;;  %462 = vmatpush.msrb.mxu2 %v1357_v3  ;;  %420 = vmatpush.msra.mxu3 %v1361_v6  ;;  %v1049_v14 = vld [vmem:[%s1559_s2] ss:$0 sm:$0xff] }
  0xab   :  { %v1044_v19 = vpack.i.bf16 %v219_v18, %v211_v16  ;;  %v214_v58 = vld [vmem:[#allocation2 + $0x1a] sm:$0xff]  ;;  %v215_v5 = vld [vmem:[#allocation2 + $0x22] sm:$0xff] }
  0xac   :  { %1040 = vrot.lane.b32.xlu2 %v1039_v17, %s1193_s14  ;;  %v207_v4 = vld [vmem:[#allocation2 + $0x20] sm:$0xff]  ;;  %463 = vmatpush.msrb.mxu2 %v1361_v6 }
  0xad   :  { %1045 = vrot.lane.b32.xlu0 %v1044_v19, %s1193_s14  ;;  %421 = vmatpush.msra.mxu3 %v1369_v9 }
  0xae   :  { %464 = vmatpush.msrb.mxu2 %v1369_v9 }
  0xaf   :  { %422 = vmatpush.msra.mxu3 %v1371_v10 }
  0xb0   :  { %465 = vmatpush.msrb.mxu2 %v1371_v10 }
  0xb1   :  { %997 = vmatmul.msk.f32.gmra.mxu2 %vm199_vm4, %v223_v20  ;;  %423 = vmatpush.msra.mxu3 %v1375_v11 }
  0xb2   :  { %466 = vmatpush.msrb.mxu2 %v1375_v11 }
  0xb3   :  { %424 = vmatpush.msra.mxu3 %v1379_v12 }
  0xb4   :  { %467 = vmatpush.msrb.mxu2 %v1379_v12 }
 0x106   :  { %v1041_v51 = vpop.permute.xlu2 %1040 }
 0x107   :  { %v1043_v54 = vunpack.i.h.bf16 %v1041_v51  ;;  %v1042_v55 = vunpack.i.l.bf16 %v1041_v51 }
 0x109   :  { %v258_v60 = vsel %vm199_vm4, %v206_v57, %v1042_v55  ;;  %v262_v61 = vsel %vm199_vm4, %v214_v58, %v1043_v54  ;;  %v581_v58 = vld [vmem:[#allocation9 + $0xf8] sm:$0xff] }
 0x10a   :  { %647 = vmatpush.msrb.mxu1 %v581_v58  ;;  %v592_v58 = vld [vmem:[#allocation9 + $0x150] sm:$0xff] }
 0x10e   :  { %v1036_v40 = vpop.permute.xlu1 %1035 }
 0x10f   :  { %v1031_v33 = vpop.permute.xlu0 %1030  ;;  %v1038_v43 = vunpack.i.h.bf16 %v1036_v40  ;;  %v1037_v44 = vunpack.i.l.bf16 %v1036_v40 }
 0x110   :  { %v1033_v34 = vunpack.i.h.bf16 %v1031_v33  ;;  %v1032_v35 = vunpack.i.l.bf16 %v1031_v33 }
 0x111   :  { %v257_v49 = vsel %vm199_vm4, %v205_v46, %v1037_v44  ;;  %v261_v50 = vsel %vm199_vm4, %v213_v47, %v1038_v43 }
 0x112   :  { %v256_v38 = vsel %vm199_vm4, %v204_v36, %v1032_v35  ;;  %v260_v39 = vsel %vm199_vm4, %v212_v37, %v1033_v34 }
 0x113   :  { %336 = vmatmul.f32.vlgmr.msra.gmra.mxu0 %v256_v38  ;;  %365 = vmatmul.f32.vlgmr.msra.gmra.mxu1 %v260_v39 }
 0x11b   :  { %339 = vmatmul.f32.gmra.mxu0 %v257_v49  ;;  %368 = vmatmul.f32.gmra.mxu1 %v261_v50 }
 0x11c   :  { %v395_v13 = vpop.f32.mrf.mxu2 }
 0x11f   :  { %v1046_v62 = vpop.permute.xlu0 %1045 }
 0x120   :  { %v1048_v1 = vunpack.i.h.bf16 %v1046_v62  ;;  %v1047_v2 = vunpack.i.l.bf16 %v1046_v62 }
 0x122   :  { %v259_v7 = vsel %vm199_vm4, %v207_v4, %v1047_v2  ;;  %v263_v8 = vsel %vm199_vm4, %v215_v5, %v1048_v1  ;;  %v580_v1 = vld [vmem:[#allocation9 + $0xf0] sm:$0xff] }
 0x123   :  { %342 = vmatmul.f32.gmra.mxu0 %v258_v60  ;;  %371 = vmatmul.f32.gmra.mxu1 %v262_v61 }
 0x124   :  { %v398_v20 = vpop.f32.mrf.mxu2  ;;  %648 = vmatpush.msrb.mxu1 %v580_v1 }
 0x12b   :  { %345 = vmatmul.f32.gmra.mxu0 %v259_v7  ;;  %374 = vmatmul.f32.gmra.mxu1 %v263_v8  ;;  %v579_v7 = vld [vmem:[#allocation9 + $0xe8] sm:$0xff] }
 0x12c   :  { %v401_v31 = vpop.f32.mrf.mxu2  ;;  %649 = vmatpush.msrb.mxu1 %v579_v7  ;;  %v571_v7 = vld [vmem:[#allocation9 + $0xa8] sm:$0xff] }
 0x134   :  { %v404_v39 = vpop.f32.mrf.mxu2 }
 0x190   :  { %v337_v15 = vpop.f32.mrf.mxu0  ;;  %v366_v16 = vpop.f32.mrf.mxu1 }
 0x191   :  { %v338_v17 = vadd.f32 %v1049_v14, %v337_v15 }
 0x193   :  { %v367_v18 = vadd.f32 %v366_v16, %v338_v17  ;;  %v597_v17 = vld [vmem:[#allocation9 + $0x178] sm:$0xff] }
 0x194   :  { %676 = vmatpush.msrb.mxu3 %v597_v17 }
 0x195   :  { %v1388_v19 = vadd.f32 %v395_v13, %v367_v18  ;;  %v565_v18 = vld [vmem:[#allocation9 + $0x78] sm:$0xff] }
 0x196   :  { %618 = vmatpush.msrb.mxu0 %v565_v18  ;;  %v589_v18 = vld [vmem:[#allocation9 + $0x138] sm:$0xff] }
 0x197   :  { %425 = vmatmul.f32.vlgmr.msra.gmra.mxu3 %v1388_v19  ;;  %v448_v21 = vmul.f32 %v1388_v19, %v1388_v19 }
 0x198   :  { %v340_v22 = vpop.f32.mrf.mxu0  ;;  %v369_v23 = vpop.f32.mrf.mxu1 }
 0x199   :  { %v341_v24 = vadd.f32 %v1049_v14, %v340_v22  ;;  %468 = vmatmul.f32.vlgmr.msrb.gmra.mxu2 %v448_v21  ;;  %v577_v21 = vld [vmem:[#allocation9 + $0xd8] sm:$0xff] }
 0x19b   :  { %v370_v25 = vadd.f32 %v369_v23, %v341_v24  ;;  %v596_v24 = vld [vmem:[#allocation9 + $0x170] sm:$0xff] }
 0x19c   :  { %677 = vmatpush.msrb.mxu3 %v596_v24  ;;  %v556_v24 = vld [vmem:[#allocation9 + $0x30] sm:$0xff] }
 0x19d   :  { %v1393_v26 = vadd.f32 %v398_v20, %v370_v25  ;;  %v613_v20 = vld [vmem:[#allocation9 + $0x1f8] sm:$0xff]  ;;  %v564_v25 = vld [vmem:[#allocation9 + $0x70] sm:$0xff] }
 0x19e   :  { %705 = vmatpush.msra.mxu2 %v613_v20  ;;  %619 = vmatpush.msrb.mxu0 %v564_v25  ;;  %v557_v20 = vld [vmem:[#allocation9 + $0x38] sm:$0xff]  ;;  %v604_v25 = vld [vmem:[#allocation9 + $0x1b0] sm:$0xff] }
 0x19f   :  { %428 = vmatmul.f32.gmra.mxu3 %v1393_v26  ;;  %v449_v27 = vmul.f32 %v1393_v26, %v1393_v26 }
 0x1a0   :  { %v343_v28 = vpop.f32.mrf.mxu0  ;;  %v372_v29 = vpop.f32.mrf.mxu1 }
 0x1a1   :  { %v344_v30 = vadd.f32 %v1049_v14, %v343_v28  ;;  %471 = vmatmul.f32.gmra.mxu2 %v449_v27  ;;  %v612_v27 = vld [vmem:[#allocation9 + $0x1f0] sm:$0xff] }
 0x1a2   :  { %v576_v28 = vld [vmem:[#allocation9 + $0xd0] sm:$0xff]  ;;  %706 = vmatpush.msra.mxu2 %v612_v27  ;;  %v587_v27 = vld [vmem:[#allocation9 + $0x128] sm:$0xff] }
 0x1a3   :  { %v373_v32 = vadd.f32 %v372_v29, %v344_v30 }
 0x1a5   :  { %v1398_v33 = vadd.f32 %v401_v31, %v373_v32  ;;  %v595_v31 = vld [vmem:[#allocation9 + $0x168] sm:$0xff] }
 0x1a6   :  { %v563_v32 = vld [vmem:[#allocation9 + $0x68] sm:$0xff]  ;;  %678 = vmatpush.msrb.mxu3 %v595_v31  ;;  %v554_v31 = vld [vmem:[#allocation9 + $0x20] sm:$0xff] }
 0x1a7   :  { %431 = vmatmul.f32.gmra.mxu3 %v1398_v33  ;;  %v450_v34 = vmul.f32 %v1398_v33, %v1398_v33  ;;  %620 = vmatpush.msrb.mxu0 %v563_v32  ;;  %v602_v32 = vld [vmem:[#allocation9 + $0x1a0] sm:$0xff] }
 0x1a8   :  { %v346_v35 = vpop.f32.mrf.mxu0  ;;  %v375_v37 = vpop.f32.mrf.mxu1 }
 0x1a9   :  { %v347_v36 = vadd.f32 %v1049_v14, %v346_v35  ;;  %474 = vmatmul.f32.gmra.mxu2 %v450_v34  ;;  %v578_v14 = vld [vmem:[#allocation9 + $0xe0] sm:$0xff]  ;;  %v611_v34 = vld [vmem:[#allocation9 + $0x1e8] sm:$0xff] }
 0x1aa   :  { %650 = vmatpush.msrb.mxu1 %v578_v14  ;;  %v575_v35 = vld [vmem:[#allocation9 + $0xc8] sm:$0xff]  ;;  %707 = vmatpush.msra.mxu2 %v611_v34  ;;  %v558_v14 = vld [vmem:[#allocation9 + $0x40] sm:$0xff]  ;;  %v585_v34 = vld [vmem:[#allocation9 + $0x118] sm:$0xff] }
 0x1ab   :  { %v376_v38 = vadd.f32 %v375_v37, %v347_v36 }
 0x1ac   :  { %651 = vmatpush.msrb.mxu1 %v577_v21  ;;  %v605_v21 = vld [vmem:[#allocation9 + $0x1b8] sm:$0xff] }
 0x1ad   :  { %v1403_v40 = vadd.f32 %v404_v39, %v376_v38  ;;  %v594_v38 = vld [vmem:[#allocation9 + $0x160] sm:$0xff] }
 0x1ae   :  { %652 = vmatpush.msrb.mxu1 %v576_v28  ;;  %v562_v39 = vld [vmem:[#allocation9 + $0x60] sm:$0xff]  ;;  %679 = vmatpush.msrb.mxu3 %v594_v38  ;;  %v555_v28 = vld [vmem:[#allocation9 + $0x28] sm:$0xff] }
 0x1af   :  { %434 = vmatmul.f32.gmra.mxu3 %v1403_v40  ;;  %v451_v43 = vmul.f32 %v1403_v40, %v1403_v40  ;;  %621 = vmatpush.msrb.mxu0 %v562_v39  ;;  %v584_v39 = vld [vmem:[#allocation9 + $0x110] sm:$0xff] }
 0x1b0   :  { %653 = vmatpush.msrb.mxu1 %v575_v35  ;;  %v553_v35 = vld [vmem:[#allocation9 + $0x18] sm:$0xff] }
 0x1b1   :  { %477 = vmatmul.f32.gmra.mxu2 %v451_v43  ;;  %v610_v43 = vld [vmem:[#allocation9 + $0x1e0] sm:$0xff] }
 0x1b2   :  { %708 = vmatpush.msra.mxu2 %v610_v43  ;;  %v552_v43 = vld [vmem:[#allocation9 + $0x10] sm:$0xff] }
 0x21a   :  { %v426_v44 = vpop.f32.mrf.mxu3 }
 0x21c   :  { %v469_v46 = vpop.f32.mrf.mxu2 }
 0x222   :  { %v429_v47 = vpop.f32.mrf.mxu3 }
 0x223   :  { %v438_v54 = vadd.f32 %v429_v47, %v426_v44  ;;  %v574_v44 = vld [vmem:[#allocation9 + $0xc0] sm:$0xff] }
 0x224   :  { %v472_v49 = vpop.f32.mrf.mxu2  ;;  %654 = vmatpush.msrb.mxu1 %v574_v44  ;;  %v567_v44 = vld [vmem:[#allocation9 + $0x88] sm:$0xff] }
 0x225   :  { %v481_v55 = vadd.f32 %v472_v49, %v469_v46  ;;  %v593_v49 = vld [vmem:[#allocation9 + $0x158] sm:$0xff] }
 0x226   :  { %680 = vmatpush.msrb.mxu3 %v593_v49  ;;  %v600_v49 = vld [vmem:[#allocation9 + $0x190] sm:$0xff] }
 0x228   :  { %681 = vmatpush.msrb.mxu3 %v592_v58  ;;  %v582_v58 = vld [vmem:[#allocation9 + $0x100] sm:$0xff] }
 0x22a   :  { %v432_v50 = vpop.f32.mrf.mxu3 }
 0x22b   :  { %v439_v57 = vadd.f32 %v438_v54, %v432_v50  ;;  %v561_v50 = vld [vmem:[#allocation9 + $0x58] sm:$0xff] }
 0x22c   :  { %v475_v51 = vpop.f32.mrf.mxu2  ;;  %622 = vmatpush.msrb.mxu0 %v561_v50  ;;  %v573_v54 = vld [vmem:[#allocation9 + $0xb8] sm:$0xff]  ;;  %v566_v50 = vld [vmem:[#allocation9 + $0x80] sm:$0xff] }
 0x22d   :  { %v482_v61 = vadd.f32 %v481_v55, %v475_v51  ;;  %v609_v51 = vld [vmem:[#allocation9 + $0x1d8] sm:$0xff]  ;;  %655 = vmatpush.msrb.mxu1 %v573_v54  ;;  %v551_v54 = vld [vmem:[#allocation9 + $0x8] sm:$0xff] }
 0x22e   :  { %709 = vmatpush.msra.mxu2 %v609_v51  ;;  %v583_v51 = vld [vmem:[#allocation9 + $0x108] sm:$0xff] }
 0x232   :  { %v435_v60 = vpop.f32.mrf.mxu3 }
 0x233   :  { %v440_v62 = vadd.f32 %v439_v57, %v435_v60  ;;  %v560_v60 = vld [vmem:[#allocation9 + $0x50] sm:$0xff] }
 0x234   :  { %v478_v2 = vpop.f32.mrf.mxu2  ;;  %623 = vmatpush.msrb.mxu0 %v560_v60  ;;  %v550_v60 = vld [vmem:[#allocation9] sm:$0xff] }
 0x235   :  { %v441_v4 = vrot.slane %v440_v62, 4  ;;  %v483_v5 = vadd.f32 %v482_v61, %v478_v2  ;;  %v608_v61 = vld [vmem:[#allocation9 + $0x1d0] sm:$0xff]  ;;  %v591_v2 = vld [vmem:[#allocation9 + $0x148] sm:$0xff] }
 0x236   :  { %710 = vmatpush.msra.mxu2 %v608_v61  ;;  %682 = vmatpush.msrb.mxu3 %v591_v2  ;;  %v407_v2 = vld [vmem:[%s1560_s3] sm:$0x1] }
 0x237   :  { %v442_v8 = vadd.f32 %v441_v4, %v440_v62  ;;  %v484_v13 = vrot.slane %v483_v5, 4  ;;  %v572_v62 = vld [vmem:[#allocation9 + $0xb0] sm:$0xff]  ;;  %v559_v4 = vld [vmem:[#allocation9 + $0x48] sm:$0xff] }
 0x238   :  { %656 = vmatpush.msrb.mxu1 %v572_v62  ;;  %624 = vmatpush.msrb.mxu0 %v559_v4  ;;  %v598_v62 = vld [vmem:[#allocation9 + $0x180] sm:$0xff] }
 0x239   :  { %v443_v15 = vrot.slane %v442_v8, 2  ;;  %v485_v16 = vadd.f32 %v484_v13, %v483_v5  ;;  %v607_v5 = vld [vmem:[#allocation9 + $0x1c8] sm:$0xff]  ;;  %v590_v13 = vld [vmem:[#allocation9 + $0x140] sm:$0xff] }
 0x23a   :  { %711 = vmatpush.msra.mxu2 %v607_v5  ;;  %657 = vmatpush.msrb.mxu1 %v571_v7 }
 0x23b   :  { %v444_v22 = vadd.f32 %v443_v15, %v442_v8  ;;  %v486_v23 = vrot.slane %v485_v16, 2  ;;  %v606_v15 = vld [vmem:[#allocation9 + $0x1c0] sm:$0xff]  ;;  %683 = vmatpush.msrb.mxu3 %v590_v13  ;;  %625 = vmatpush.msrb.mxu0 %v558_v14 }
 0x23c   :  { %712 = vmatpush.msra.mxu2 %v606_v15 }
 0x23d   :  { %v445_v29 = vrot.slane %v444_v22, 1  ;;  %v487_v30 = vadd.f32 %v486_v23, %v485_v16  ;;  %v570_v16 = vld [vmem:[#allocation9 + $0xa0] sm:$0xff]  ;;  %684 = vmatpush.msrb.mxu3 %v589_v18  ;;  %626 = vmatpush.msrb.mxu0 %v557_v20  ;;  %v588_v23 = vld [vmem:[#allocation9 + $0x130] sm:$0xff] }
 0x23e   :  { %658 = vmatpush.msrb.mxu1 %v570_v16  ;;  %713 = vmatpush.msra.mxu2 %v605_v21 }
 0x23f   :  { %v446_v36 = vadd.f32 %v445_v29, %v444_v22  ;;  %v488_v37 = vrot.slane %v487_v30, 1  ;;  %v569_v22 = vld [vmem:[#allocation9 + $0x98] sm:$0xff]  ;;  %685 = vmatpush.msrb.mxu3 %v588_v23  ;;  %627 = vmatpush.msrb.mxu0 %v556_v24  ;;  %v603_v29 = vld [vmem:[#allocation9 + $0x1a8] sm:$0xff] }
 0x240   :  { %659 = vmatpush.msrb.mxu1 %v569_v22  ;;  %714 = vmatpush.msra.mxu2 %v604_v25  ;;  %v1050_v22 = vld [vmem:[%s1563_s6] ss:$0 sm:$0xff] }
 0x241   :  { %v1408_v46 = vmul.f32 0.001953125, %v446_v36  ;;  %v489_v47 = vadd.f32 %v488_v37, %v487_v30  ;;  %v586_v30 = vld [vmem:[#allocation9 + $0x120] sm:$0xff]  ;;  %686 = vmatpush.msrb.mxu3 %v587_v27  ;;  %628 = vmatpush.msrb.mxu0 %v555_v28  ;;  %v568_v36 = vld [vmem:[#allocation9 + $0x90] sm:$0xff]  ;;  %v601_v37 = vld [vmem:[#allocation9 + $0x198] sm:$0xff] }
 0x242   :  { %715 = vmatpush.msra.mxu2 %v603_v29  ;;  %660 = vmatpush.msrb.mxu1 %v568_v36 }
 0x243   :  { %v491_v55 = vmul.f32 %v1408_v46, %v1408_v46  ;;  %v490_v57 = vmul.f32 0.001953125, %v489_v47  ;;  %687 = vmatpush.msrb.mxu3 %v586_v30  ;;  %629 = vmatpush.msrb.mxu0 %v554_v31 }
 0x244   :  { %716 = vmatpush.msra.mxu2 %v602_v32  ;;  %661 = vmatpush.msrb.mxu1 %v567_v44 }
 0x245   :  { %v492_v1 = vsub.f32 %v490_v57, %v491_v55  ;;  %688 = vmatpush.msrb.mxu3 %v585_v34  ;;  %630 = vmatpush.msrb.mxu0 %v553_v35  ;;  %v599_v57 = vld [vmem:[#allocation9 + $0x188] sm:$0xff] }
 0x246   :  { %717 = vmatpush.msra.mxu2 %v601_v37  ;;  %662 = vmatpush.msrb.mxu1 %v566_v50 }
 0x247   :  { %v493_v8 = vmax.f32 %v492_v1, 0.0  ;;  %689 = vmatpush.msrb.mxu3 %v584_v39  ;;  %631 = vmatpush.msrb.mxu0 %v552_v43 }
 0x248   :  { %718 = vmatpush.msra.mxu2 %v600_v49  ;;  %779 = vmatpush.msra.mxu1 %v1315_v41 }
 0x249   :  { %v1412_v17 = vadd.f32 1e-05, %v493_v8  ;;  %690 = vmatpush.msrb.mxu3 %v583_v51  ;;  %632 = vmatpush.msrb.mxu0 %v551_v54  ;;  %v408_v8 = vld [vmem:[%s1561_s4] sm:$0x1] }
 0x24a   :  { %719 = vmatpush.msra.mxu2 %v599_v57  ;;  %780 = vmatpush.msra.mxu1 %v1317_v42 }
 0x24b   :  { %1051 = vrsqrt.f32 %v1412_v17  ;;  %691 = vmatpush.msrb.mxu3 %v582_v58  ;;  %633 = vmatpush.msrb.mxu0 %v550_v60  ;;  %vm501_vm6 = vweird.f32 %v1412_v17 }
 0x24c   :  { %720 = vmatpush.msra.mxu2 %v598_v62  ;;  %781 = vmatpush.msra.mxu1 %v1321_v45 }
 0x24d   :  { %736 = vmatpush.msra.mxu0 %v1315_v41  ;;  %998 = vmatpush.msra.mxu3 %v1315_v41 }
 0x24e   :  { %782 = vmatpush.msra.mxu1 %v1325_v48 }
 0x24f   :  { %737 = vmatpush.msra.mxu0 %v1317_v42  ;;  %999 = vmatpush.msra.mxu3 %v1317_v42 }
 0x250   :  { %783 = vmatpush.msra.mxu1 %v1331_v52 }
 0x251   :  { %v1052_v38 = vpop.eup %1051  ;;  %738 = vmatpush.msra.mxu0 %v1321_v45  ;;  %1000 = vmatpush.msra.mxu3 %v1321_v45 }
 0x252   :  { %v496_v47 = vmul.f32 %v1052_v38, %v1412_v17  ;;  %vm502_vm5 = vweird.f32 %v1052_v38  ;;  %784 = vmatpush.msra.mxu1 %v1335_v53 }
 0x253   :  { %vm503_vm7 = vmor %vm501_vm6, %vm502_vm5  ;;  %739 = vmatpush.msra.mxu0 %v1325_v48  ;;  %1001 = vmatpush.msra.mxu3 %v1325_v48 }
 0x254   :  { %v497_v55 = vmul.f32 %v1052_v38, %v496_v47  ;;  %785 = vmatpush.msra.mxu1 %v1339_v56 }
 0x255   :  { %740 = vmatpush.msra.mxu0 %v1331_v52  ;;  %1002 = vmatpush.msra.mxu3 %v1331_v52 }
 0x256   :  { %v498_v61 = vmul.f32 0.5, %v497_v55  ;;  %786 = vmatpush.msra.mxu1 %v1343_v59 }
 0x257   :  { %741 = vmatpush.msra.mxu0 %v1335_v53  ;;  %1003 = vmatpush.msra.mxu3 %v1335_v53 }
 0x258   :  { %v499_v1 = vsub.f32 1.5, %v498_v61  ;;  %787 = vmatpush.msra.mxu1 %v1349_v63 }
 0x259   :  { %742 = vmatpush.msra.mxu0 %v1339_v56  ;;  %1004 = vmatpush.msra.mxu3 %v1339_v56 }
 0x25a   :  { %v500_v4 = vmul.f32 %v1052_v38, %v499_v1  ;;  %788 = vmatpush.msra.mxu1 %v1353_v0 }
 0x25b   :  { %743 = vmatpush.msra.mxu0 %v1343_v59  ;;  %1005 = vmatpush.msra.mxu3 %v1343_v59 }
 0x25c   :  { %v504_v5 = vsel %vm503_vm7, %v1052_v38, %v500_v4  ;;  %789 = vmatpush.msra.mxu1 %v1357_v3 }
 0x25d   :  { %v505_v7 = vmul.f32 %v504_v5, %v407_v2  ;;  %744 = vmatpush.msra.mxu0 %v1349_v63  ;;  %1006 = vmatpush.msra.mxu3 %v1349_v63 }
 0x25e   :  { %790 = vmatpush.msra.mxu1 %v1361_v6 }
 0x25f   :  { %v506_v41 = vmul.f32 %v505_v7, %v1408_v46  ;;  %v509_v13 = vperm.slane %v505_v7, 0  ;;  %745 = vmatpush.msra.mxu0 %v1353_v0  ;;  %1007 = vmatpush.msra.mxu3 %v1353_v0 }
 0x260   :  { %791 = vmatpush.msra.mxu1 %v1369_v9 }
 0x261   :  { %v507_v42 = vsub.f32 %v408_v8, %v506_v41  ;;  %v511_v14 = vmul.f32 %v509_v13, %v1388_v19  ;;  %v512_v45 = vmul.f32 %v509_v13, %v1393_v26  ;;  %v513_v46 = vmul.f32 %v509_v13, %v1398_v33  ;;  %746 = vmatpush.msra.mxu0 %v1357_v3 }
 0x262   :  { %v514_v15 = vmul.f32 %v509_v13, %v1403_v40  ;;  %1008 = vmatpush.msra.mxu3 %v1357_v3  ;;  %792 = vmatpush.msra.mxu1 %v1371_v10 }
 0x263   :  { %v516_v16 = vperm.slane %v507_v42, 0  ;;  %747 = vmatpush.msra.mxu0 %v1361_v6 }
 0x264   :  { %1009 = vmatpush.msra.mxu3 %v1361_v6  ;;  %793 = vmatpush.msra.mxu1 %v1375_v11 }
 0x265   :  { %v518_v48 = vadd.f32 %v516_v16, %v511_v14  ;;  %v519_v17 = vadd.f32 %v516_v16, %v512_v45  ;;  %v520_v19 = vadd.f32 %v516_v16, %v513_v46  ;;  %v521_v18 = vadd.f32 %v516_v16, %v514_v15  ;;  %748 = vmatpush.msra.mxu0 %v1369_v9 }
 0x266   :  { %1010 = vmatpush.msra.mxu3 %v1369_v9  ;;  %794 = vmatpush.msra.mxu1 %v1379_v12 }
 0x267   :  { %v522_v52 = vmax.f32 %v518_v48, 0.0  ;;  %v523_v26 = vmax.f32 %v519_v17, 0.0  ;;  %v524_v33 = vmax.f32 %v520_v19, 0.0  ;;  %v525_v40 = vmax.f32 %v521_v18, 0.0  ;;  %749 = vmatpush.msra.mxu0 %v1371_v10 }
 0x268   :  { %1011 = vmatpush.msra.mxu3 %v1371_v10 }
 0x269   :  { %530 = vst [vmem:[#allocation3 + $0x2] sm:$0xff] %v522_v52  ;;  %663 = vmatmul.f32.vlgmr.msrb.gmra.mxu1 %v522_v52  ;;  %750 = vmatpush.msra.mxu0 %v1375_v11 }
 0x26a   :  { %531 = vst [vmem:[#allocation3 + $0xa] sm:$0xff] %v523_v26  ;;  %1012 = vmatpush.msra.mxu3 %v1375_v11 }
 0x26b   :  { %532 = vst [vmem:[#allocation3 + $0x1a] sm:$0xff] %v524_v33  ;;  %751 = vmatpush.msra.mxu0 %v1379_v12 }
 0x26c   :  { %533 = vst [vmem:[#allocation3 + $0x22] sm:$0xff] %v525_v40  ;;  %1013 = vmatpush.msra.mxu3 %v1379_v12 }
 0x270   :  { %v534_v53 = vld [vmem:[#allocation3 + $0x1] sm:$0xff] }
 0x271   :  { %634 = vmatmul.f32.vlgmr.msrb.gmra.mxu0 %v534_v53  ;;  %v542_v56 = vld [vmem:[#allocation3 + $0x3] sm:$0xff]  ;;  %666 = vmatmul.f32.gmra.mxu1 %v523_v26  ;;  %v543_v0 = vld [vmem:[#allocation3 + $0xb] sm:$0xff] }
 0x272   :  { %v546_v59 = vld [vmem:[#allocation3 + $0x4] sm:$0xff]  ;;  %692 = vmatmul.f32.vlgmr.msrb.gmra.mxu3 %v542_v56  ;;  %v547_v3 = vld [vmem:[#allocation3 + $0xc] sm:$0xff]  ;;  %v536_v6 = vld [vmem:[#allocation3 + $0x19] sm:$0xff] }
 0x273   :  { %721 = vmatmul.f32.vlgmr.msra.gmra.mxu2 %v546_v59  ;;  %v535_v63 = vld [vmem:[#allocation3 + $0x9] sm:$0xff]  ;;  %v544_v9 = vld [vmem:[#allocation3 + $0x1b] sm:$0xff] }
 0x274   :  { %v548_v10 = vld [vmem:[#allocation3 + $0x1c] sm:$0xff]  ;;  %v549_v21 = vld [vmem:[#allocation3 + $0x24] sm:$0xff] }
 0x275   :  { %v537_v20 = vld [vmem:[#allocation3 + $0x21] sm:$0xff] }
 0x276   :  { %v545_v11 = vld [vmem:[#allocation3 + $0x23] sm:$0xff] }
 0x279   :  { %637 = vmatmul.f32.gmra.mxu0 %v535_v63  ;;  %669 = vmatmul.f32.gmra.mxu1 %v524_v33 }
 0x27a   :  { %695 = vmatmul.f32.gmra.mxu3 %v543_v0 }
 0x27b   :  { %724 = vmatmul.f32.gmra.mxu2 %v547_v3 }
 0x281   :  { %640 = vmatmul.f32.gmra.mxu0 %v536_v6  ;;  %672 = vmatmul.f32.gmra.mxu1 %v525_v40 }
 0x282   :  { %698 = vmatmul.f32.gmra.mxu3 %v544_v9 }
 0x283   :  { %727 = vmatmul.f32.gmra.mxu2 %v548_v10 }
 0x289   :  { %643 = vmatmul.f32.gmra.mxu0 %v537_v20 }
 0x28a   :  { %701 = vmatmul.f32.gmra.mxu3 %v545_v11 }
 0x28b   :  { %730 = vmatmul.f32.gmra.mxu2 %v549_v21 }
 0x2e6   :  { %v664_v23 = vpop.f32.mrf.mxu1 }
 0x2ee   :  { %v635_v24 = vpop.f32.mrf.mxu0  ;;  %v667_v31 = vpop.f32.mrf.mxu1 }
 0x2ef   :  { %v636_v12 = vadd.f32 %v1050_v22, %v635_v24 }
 0x2f1   :  { %v665_v25 = vadd.f32 %v664_v23, %v636_v12 }
 0x2f5   :  { %v693_v27 = vpop.f32.mrf.mxu3 }
 0x2f6   :  { %v722_v28 = vpop.f32.mrf.mxu2  ;;  %v694_v29 = vadd.f32 %v693_v27, %v665_v25  ;;  %v638_v30 = vpop.f32.mrf.mxu0 }
 0x2f7   :  { %v639_v34 = vadd.f32 %v1050_v22, %v638_v30  ;;  %v670_v49 = vpop.f32.mrf.mxu1 }
 0x2f8   :  { %v1479_v32 = vadd.f32 %v722_v28, %v694_v29 }
 0x2f9   :  { %v668_v36 = vadd.f32 %v667_v31, %v639_v34  ;;  %v734_v34 = vld [vmem:[%s1564_s7] sm:$0x1]  ;;  %s1194_s7 = smov 112  }
 0x2fa   :  { %v775_v35 = vmul.f32 %v1479_v32, %v1479_v32  ;;  %752 = vmatmul.f32.vlgmr.msra.gmra.mxu0 %v1479_v32 }
 0x2fc   :  { %795 = vmatmul.f32.vlgmr.msra.gmra.mxu1 %v775_v35 }
 0x2fd   :  { %v696_v37 = vpop.f32.mrf.mxu3 }
 0x2fe   :  { %v725_v38 = vpop.f32.mrf.mxu2  ;;  %v697_v39 = vadd.f32 %v696_v37, %v668_v36  ;;  %v641_v43 = vpop.f32.mrf.mxu0 }
 0x2ff   :  { %v642_v47 = vadd.f32 %v1050_v22, %v641_v43  ;;  %v673_v1 = vpop.f32.mrf.mxu1 }
 0x300   :  { %v1484_v44 = vadd.f32 %v725_v38, %v697_v39  ;;  %v735_v38 = vld [vmem:[%s1565_s8] sm:$0x1]  ;;  %s1195_s8 = smov 96  }
 0x301   :  { %v671_v51 = vadd.f32 %v670_v49, %v642_v47 }
 0x302   :  { %755 = vmatmul.f32.vlgmr.msra.gmra.mxu3 %v1484_v44  ;;  %v776_v50 = vmul.f32 %v1484_v44, %v1484_v44 }
 0x304   :  { %798 = vmatmul.f32.gmra.mxu1 %v776_v50 }
 0x305   :  { %v699_v54 = vpop.f32.mrf.mxu3 }
 0x306   :  { %v728_v55 = vpop.f32.mrf.mxu2  ;;  %v700_v57 = vadd.f32 %v699_v54, %v671_v51  ;;  %v644_v58 = vpop.f32.mrf.mxu0 }
 0x307   :  { %v645_v61 = vadd.f32 %v1050_v22, %v644_v58 }
 0x308   :  { %v1489_v60 = vadd.f32 %v728_v55, %v700_v57 }
 0x309   :  { %v674_v2 = vadd.f32 %v673_v1, %v645_v61 }
 0x30a   :  { %758 = vmatmul.f32.gmra.mxu3 %v1489_v60  ;;  %v777_v62 = vmul.f32 %v1489_v60, %v1489_v60 }
 0x30c   :  { %801 = vmatmul.f32.gmra.mxu1 %v777_v62 }
 0x30d   :  { %v702_v4 = vpop.f32.mrf.mxu3 }
 0x30e   :  { %v703_v5 = vadd.f32 %v702_v4, %v674_v2  ;;  %v731_v7 = vpop.f32.mrf.mxu2 }
 0x310   :  { %v732_v8 = vadd.f32 %v731_v7, %v703_v5 }
 0x312   :  { %761 = vmatmul.f32.gmra.mxu3 %v732_v8  ;;  %v778_v41 = vmul.f32 %v732_v8, %v732_v8 }
 0x314   :  { %804 = vmatmul.f32.gmra.mxu1 %v778_v41 }
 0x377   :  { %v753_v48 = vpop.f32.mrf.mxu0 }
 0x379   :  { %v796_v13 = vpop.f32.mrf.mxu1 }
 0x381   :  { %v799_v42 = vpop.f32.mrf.mxu1 }
 0x382   :  { %v808_v15 = vadd.f32 %v799_v42, %v796_v13 }
 0x385   :  { %v756_v14 = vpop.f32.mrf.mxu3 }
 0x386   :  { %v765_v19 = vadd.f32 %v756_v14, %v753_v48 }
 0x389   :  { %v802_v45 = vpop.f32.mrf.mxu1 }
 0x38a   :  { %v809_v16 = vadd.f32 %v808_v15, %v802_v45 }
 0x38d   :  { %v759_v46 = vpop.f32.mrf.mxu3 }
 0x38e   :  { %v766_v52 = vadd.f32 %v765_v19, %v759_v46 }
 0x391   :  { %v805_v17 = vpop.f32.mrf.mxu1 }
 0x392   :  { %v810_v18 = vadd.f32 %v809_v16, %v805_v17 }
 0x394   :  { %v811_v26 = vrot.slane %v810_v18, 4 }
 0x395   :  { %v762_v33 = vpop.f32.mrf.mxu3 }
 0x396   :  { %v812_v40 = vadd.f32 %v811_v26, %v810_v18  ;;  %v767_v53 = vadd.f32 %v766_v52, %v762_v33 }
 0x398   :  { %v813_v56 = vrot.slane %v812_v40, 2  ;;  %v768_v59 = vrot.slane %v767_v53, 4 }
 0x39a   :  { %v814_v63 = vadd.f32 %v813_v56, %v812_v40  ;;  %v769_v0 = vadd.f32 %v768_v59, %v767_v53 }
 0x39c   :  { %v770_v3 = vrot.slane %v769_v0, 2  ;;  %v815_v6 = vrot.slane %v814_v63, 1 }
 0x39e   :  { %v771_v9 = vadd.f32 %v770_v3, %v769_v0  ;;  %v816_v20 = vadd.f32 %v815_v6, %v814_v63 }
 0x3a0   :  { %v772_v10 = vrot.slane %v771_v9, 1  ;;  %v817_v22 = vmul.f32 0.001953125, %v816_v20 }
 0x3a2   :  { %v773_v11 = vadd.f32 %v772_v10, %v771_v9 }
 0x3a4   :  { %v774_v21 = vmul.f32 0.001953125, %v773_v11 }
 0x3a6   :  { %v818_v23 = vmul.f32 %v774_v21, %v774_v21 }
 0x3a8   :  { %v819_v24 = vsub.f32 %v817_v22, %v818_v23 }
 0x3aa   :  { %v820_v12 = vmax.f32 %v819_v24, 0.0 }
 0x3ac   :  { %v821_v25 = vadd.f32 1e-05, %v820_v12 }
 0x3ae   :  { %1053 = vrsqrt.f32 %v821_v25  ;;  %vm828_vm9 = vweird.f32 %v821_v25 }
 0x3b4   :  { %v1054_v27 = vpop.eup %1053 }
 0x3b5   :  { %v823_v28 = vmul.f32 %v1054_v27, %v821_v25  ;;  %vm829_vm8 = vweird.f32 %v1054_v27 }
 0x3b6   :  { %vm830_vm10 = vmor %vm828_vm9, %vm829_vm8 }
 0x3b7   :  { %v824_v29 = vmul.f32 %v1054_v27, %v823_v28 }
 0x3b9   :  { %v825_v30 = vmul.f32 0.5, %v824_v29 }
 0x3bb   :  { %v826_v31 = vsub.f32 1.5, %v825_v30 }
 0x3bd   :  { %v827_v35 = vmul.f32 %v1054_v27, %v826_v31 }
 0x3bf   :  { %v831_v36 = vsel %vm830_vm10, %v1054_v27, %v827_v35 }
 0x3c0   :  { %v832_v37 = vmul.f32 %v831_v36, %v734_v34 }
 0x3c2   :  { %v833_v39 = vmul.f32 %v832_v37, %v774_v21  ;;  %v836_v43 = vperm.slane %v832_v37, 0 }
 0x3c4   :  { %v834_v47 = vsub.f32 %v735_v38, %v833_v39  ;;  %v838_v49 = vmul.f32 %v836_v43, %v1479_v32  ;;  %v839_v50 = vmul.f32 %v836_v43, %v1484_v44  ;;  %v840_v51 = vmul.f32 %v836_v43, %v1489_v60 }
 0x3c5   :  { %v841_v54 = vmul.f32 %v836_v43, %v732_v8 }
 0x3c6   :  { %v843_v55 = vperm.slane %v834_v47, 0 }
 0x3c8   :  { %v845_v57 = vadd.f32 %v843_v55, %v838_v49  ;;  %v846_v58 = vadd.f32 %v843_v55, %v839_v50  ;;  %v847_v61 = vadd.f32 %v843_v55, %v840_v51  ;;  %v848_v62 = vadd.f32 %v843_v55, %v841_v54 }
 0x3ca   :  { %v849_v1 = vmax.f32 %v845_v57, 0.0  ;;  %v850_v2 = vmax.f32 %v846_v58, 0.0  ;;  %v851_v4 = vmax.f32 %v847_v61, 0.0  ;;  %v852_v5 = vmax.f32 %v848_v62, 0.0 }
 0x3cc   :  { %941 = vst.msk [vmem:[#allocation12] sm:$0xff] %vm179_vm1, %v849_v1  ;;  %861 = vrot.lane.b32.xlu0 %v851_v4, %s1194_s7  ;;  %859 = vrot.lane.b32.xlu2 %v850_v2, %s1194_s7 }
 0x3cd   :  { %942 = vst.msk [vmem:[#allocation12 + $0x8] sm:$0xff] %vm179_vm1, %v850_v2  ;;  %857 = vrot.lane.b32.xlu1 %v849_v1, %s1194_s7 }
 0x3ce   :  { %957 = vst.msk [vmem:[#allocation12 + $0x80] sm:$0xff] %vm179_vm1, %v851_v4 }
 0x3cf   :  { %958 = vst.msk [vmem:[#allocation12 + $0x88] sm:$0xff] %vm179_vm1, %v852_v5 }
 0x3d4   :  { %871 = vrot.lane.b32.xlu0 %v850_v2, %s1195_s8  ;;  %869 = vrot.lane.b32.xlu2 %v849_v1, %s1195_s8 }
 0x3d5   :  { %863 = vrot.lane.b32.xlu1 %v852_v5, %s1194_s7 }
 0x3dc   :  { %881 = vrot.lane.b32.xlu0 %v849_v1, %s1196_s25  ;;  %875 = vrot.lane.b32.xlu2 %v852_v5, %s1195_s8 }
 0x3dd   :  { %873 = vrot.lane.b32.xlu1 %v851_v4, %s1195_s8 }
 0x3e4   :  { %887 = vrot.lane.b32.xlu0 %v852_v5, %s1196_s25  ;;  %885 = vrot.lane.b32.xlu2 %v851_v4, %s1196_s25 }
 0x3e5   :  { %883 = vrot.lane.b32.xlu1 %v850_v2, %s1196_s25 }
 0x3ec   :  { %897 = vrot.lane.b32.xlu0 %v851_v4, %s1193_s14  ;;  %895 = vrot.lane.b32.xlu2 %v850_v2, %s1193_s14 }
 0x3ed   :  { %893 = vrot.lane.b32.xlu1 %v849_v1, %s1193_s14 }
 0x3f4   :  { %907 = vrot.lane.b32.xlu0 %v850_v2, %s1191_s13  ;;  %905 = vrot.lane.b32.xlu2 %v849_v1, %s1191_s13 }
 0x3f5   :  { %899 = vrot.lane.b32.xlu1 %v852_v5, %s1193_s14 }
 0x3fc   :  { %917 = vrot.lane.b32.xlu0 %v849_v1, %s1190_s12  ;;  %911 = vrot.lane.b32.xlu2 %v852_v5, %s1191_s13 }
 0x3fd   :  { %909 = vrot.lane.b32.xlu1 %v851_v4, %s1191_s13 }
 0x404   :  { %923 = vrot.lane.b32.xlu0 %v852_v5, %s1190_s12  ;;  %921 = vrot.lane.b32.xlu2 %v851_v4, %s1190_s12 }
 0x405   :  { %919 = vrot.lane.b32.xlu1 %v850_v2, %s1190_s12 }
 0x40c   :  { %933 = vrot.lane.b32.xlu0 %v851_v4, %s1189_s9  ;;  %931 = vrot.lane.b32.xlu2 %v850_v2, %s1189_s9 }
 0x40d   :  { %929 = vrot.lane.b32.xlu1 %v849_v1, %s1189_s9 }
 0x415   :  { %935 = vrot.lane.b32.xlu1 %v852_v5, %s1189_s9 }
 0x426   :  { %v860_v32 = vpop.permute.xlu2 %859 }
 0x427   :  { %944 = vst.msk [vmem:[#allocation12 + $0x18] sm:$0xff] %vm179_vm1, %v860_v32 }
 0x42e   :  { %v870_v44 = vpop.permute.xlu2 %869 }
 0x42f   :  { %945 = vst.msk [vmem:[#allocation12 + $0x20] sm:$0xff] %vm179_vm1, %v870_v44 }
 0x436   :  { %v876_v60 = vpop.permute.xlu2 %875 }
 0x437   :  { %962 = vst.msk [vmem:[#allocation12 + $0xa8] sm:$0xff] %vm179_vm1, %v876_v60 }
 0x43e   :  { %v862_v7 = vpop.permute.xlu0 %861  ;;  %v886_v8 = vpop.permute.xlu2 %885 }
 0x43f   :  { %959 = vst.msk [vmem:[#allocation12 + $0x90] sm:$0xff] %vm179_vm1, %v862_v7  ;;  %v858_v41 = vpop.permute.xlu1 %857 }
 0x440   :  { %963 = vst.msk [vmem:[#allocation12 + $0xb0] sm:$0xff] %vm179_vm1, %v886_v8 }
 0x441   :  { %943 = vst.msk [vmem:[#allocation12 + $0x10] sm:$0xff] %vm179_vm1, %v858_v41 }
 0x446   :  { %v872_v13 = vpop.permute.xlu0 %871  ;;  %v896_v42 = vpop.permute.xlu2 %895 }
 0x447   :  { %946 = vst.msk [vmem:[#allocation12 + $0x28] sm:$0xff] %vm179_vm1, %v872_v13  ;;  %v864_v14 = vpop.permute.xlu1 %863 }
 0x448   :  { %950 = vst.msk [vmem:[#allocation12 + $0x48] sm:$0xff] %vm179_vm1, %v896_v42 }
 0x449   :  { %960 = vst.msk [vmem:[#allocation12 + $0x98] sm:$0xff] %vm179_vm1, %v864_v14 }
 0x44e   :  { %v882_v45 = vpop.permute.xlu0 %881  ;;  %v906_v46 = vpop.permute.xlu2 %905 }
 0x44f   :  { %947 = vst.msk [vmem:[#allocation12 + $0x30] sm:$0xff] %vm179_vm1, %v882_v45  ;;  %v874_v15 = vpop.permute.xlu1 %873 }
 0x450   :  { %951 = vst.msk [vmem:[#allocation12 + $0x50] sm:$0xff] %vm179_vm1, %v906_v46 }
 0x451   :  { %961 = vst.msk [vmem:[#allocation12 + $0xa0] sm:$0xff] %vm179_vm1, %v874_v15 }
 0x456   :  { %v888_v16 = vpop.permute.xlu0 %887  ;;  %v912_v48 = vpop.permute.xlu2 %911 }
 0x457   :  { %964 = vst.msk [vmem:[#allocation12 + $0xb8] sm:$0xff] %vm179_vm1, %v888_v16  ;;  %v884_v17 = vpop.permute.xlu1 %883 }
 0x458   :  { %968 = vst.msk [vmem:[#allocation12 + $0xd8] sm:$0xff] %vm179_vm1, %v912_v48 }
 0x459   :  { %948 = vst.msk [vmem:[#allocation12 + $0x38] sm:$0xff] %vm179_vm1, %v884_v17 }
 0x45e   :  { %v898_v19 = vpop.permute.xlu0 %897  ;;  %v922_v18 = vpop.permute.xlu2 %921 }
 0x45f   :  { %965 = vst.msk [vmem:[#allocation12 + $0xc0] sm:$0xff] %vm179_vm1, %v898_v19  ;;  %v894_v52 = vpop.permute.xlu1 %893 }
 0x460   :  { %969 = vst.msk [vmem:[#allocation12 + $0xe0] sm:$0xff] %vm179_vm1, %v922_v18 }
 0x461   :  { %949 = vst.msk [vmem:[#allocation12 + $0x40] sm:$0xff] %vm179_vm1, %v894_v52 }
 0x466   :  { %v908_v26 = vpop.permute.xlu0 %907  ;;  %v932_v33 = vpop.permute.xlu2 %931 }
 0x467   :  { %952 = vst.msk [vmem:[#allocation12 + $0x58] sm:$0xff] %vm179_vm1, %v908_v26  ;;  %v900_v40 = vpop.permute.xlu1 %899 }
 0x468   :  { %956 = vst.msk [vmem:[#allocation12 + $0x78] sm:$0xff] %vm179_vm1, %v932_v33 }
 0x469   :  { %966 = vst.msk [vmem:[#allocation12 + $0xc8] sm:$0xff] %vm179_vm1, %v900_v40 }
 0x46e   :  { %v918_v53 = vpop.permute.xlu0 %917 }
 0x46f   :  { %953 = vst.msk [vmem:[#allocation12 + $0x60] sm:$0xff] %vm179_vm1, %v918_v53  ;;  %v910_v56 = vpop.permute.xlu1 %909 }
 0x470   :  { %967 = vst.msk [vmem:[#allocation12 + $0xd0] sm:$0xff] %vm179_vm1, %v910_v56 }
 0x476   :  { %v924_v59 = vpop.permute.xlu0 %923 }
 0x477   :  { %970 = vst.msk [vmem:[#allocation12 + $0xe8] sm:$0xff] %vm179_vm1, %v924_v59  ;;  %v920_v63 = vpop.permute.xlu1 %919 }
 0x478   :  { %954 = vst.msk [vmem:[#allocation12 + $0x68] sm:$0xff] %vm179_vm1, %v920_v63 }
 0x47e   :  { %v934_v0 = vpop.permute.xlu0 %933 }
 0x47f   :  { %971 = vst.msk [vmem:[#allocation12 + $0xf0] sm:$0xff] %vm179_vm1, %v934_v0  ;;  %v930_v3 = vpop.permute.xlu1 %929 }
 0x480   :  { %955 = vst.msk [vmem:[#allocation12 + $0x70] sm:$0xff] %vm179_vm1, %v930_v3 }
 0x487   :  { %v936_v6 = vpop.permute.xlu1 %935 }
 0x488   :  { %972 = vst.msk [vmem:[#allocation12 + $0xf8] sm:$0xff] %vm179_vm1, %v936_v6 }
 0x489   :  { %985 = dma.vmem_to_hbm [thread:$0]  %s978_s1, 4096, %s980_s28, [#allocation6], %s1184_s21, %s1184_s21, %s1185_s22  }
 0x48a   :  { %1181 = dma.done.wait [#allocation6], 4096  }
 0x48b   :  { %1182 = vsyncadd [#allocation6], 4294963200 }
 0x48c   :  { %990 = vsyncpa [#allocation5], 1 }
 0x48d   :  { %991 = vsyncpa [#allocation8], 1 }
 0x48e   :  { %992 = vsyncpa [#allocation11], 1 }
 0x48f   :  { %993 = vsyncpa [#allocation6], 1 }

</bundles_post_ra>
